<compile_context>
chip_gen: v7x
topology: tpu7x:2x2x1
jax: 0.10.0
libtpu: 0.0.40
codegen_flags: <defaults>
</compile_context>

<pallas_src>
import jax
import jax.numpy as jnp
from jax.experimental import pallas as pl
from jax.experimental.pallas import tpu as pltpu


def _round_up(x, m):
    return ((x + m - 1) // m) * m


def _mlp_kernel(*refs):
    """refs = (x_ref, w0, b0, w1, b1, ..., w{L-1}, b{L-1}, o_ref).

    Fused L-layer MLP: relu(x @ W + b) for the first L-1 layers, plain linear
    for the last.  Matmul operands are in the weight storage dtype (bf16 or
    f32); accumulation, bias add and ReLU are f32.
    """
    x_ref, *param_refs, o_ref = refs
    num_layers = len(param_refs) // 2
    compute_dtype = param_refs[0].dtype

    h = x_ref[...]  # f32 activations
    for layer in range(num_layers):
        w_ref = param_refs[2 * layer]
        b_ref = param_refs[2 * layer + 1]
        y = jnp.dot(h.astype(compute_dtype), w_ref[...],
                    preferred_element_type=jnp.float32)
        y = y + b_ref[...]                       # f32 bias add (VPU)
        h = jnp.maximum(y, 0.0) if layer < num_layers - 1 else y
    o_ref[...] = h.astype(o_ref.dtype)


def _replicated_block(i):
    # Whole weight/bias array is the block at every grid step (VMEM resident).
    return (0, 0)


def mlp_dense_pallas(x, weights, biases, *, tile_m=256,
                     param_dtype=jnp.bfloat16):
    """x: (B, in_dim) f32.  weights[i]: (fan_in_i, fan_out_i) == W_i^T of
    PyTorch nn.Linear.  biases[i]: (1, fan_out_i)."""
    B, in_dim = x.shape
    out_dim = weights[-1].shape[1]

    # ---- batch tiling: large sublane-aligned tiles, capped at 256 rows ----
    tile_m = max(8, min(int(tile_m), 256))
    tile_m = _round_up(tile_m, 8)
    tile_m = min(tile_m, _round_up(B, 8))
    b_pad = _round_up(B, tile_m)
    if b_pad != B:
        x = jnp.pad(x, ((0, b_pad - B), (0, 0)))
    grid = (b_pad // tile_m,)

    # ---- lane-dense output: pad final fan_out up to a multiple of 128 ----
    out_pad = max(128, _round_up(out_dim, 128))
    w_last, b_last = weights[-1], biases[-1]
    if out_pad != out_dim:
        w_last = jnp.pad(w_last, ((0, 0), (0, out_pad - out_dim)))
        b_last = jnp.pad(b_last, ((0, 0), (0, out_pad - out_dim)))

    ws = [w.astype(param_dtype) for w in weights[:-1]] + [w_last.astype(param_dtype)]
    bs = [b.astype(jnp.float32) for b in biases[:-1]] + [b_last.astype(jnp.float32)]

    in_specs = [pl.BlockSpec((tile_m, in_dim), lambda i: (i, 0))]
    flat_params = []
    for w, b in zip(ws, bs):
        # block == full array shape, so the (8,128) divisibility rule is bypassed
        in_specs.append(pl.BlockSpec(w.shape, _replicated_block))
        in_specs.append(pl.BlockSpec(b.shape, _replicated_block))
        flat_params.extend([w, b])

    out_spec = pl.BlockSpec((tile_m, out_pad), lambda i: (i, 0))

    fn = pl.pallas_call(
        _mlp_kernel,
        out_shape=jax.ShapeDtypeStruct((b_pad, out_pad), x.dtype),
        grid_spec=pltpu.PrefetchScalarGridSpec(
            num_scalar_prefetch=0,
            grid=grid,
            in_specs=in_specs,
            out_specs=out_spec,
        ),
        compiler_params=pltpu.CompilerParams(
            dimension_semantics=("parallel",)),
    )
    out = fn(x, *flat_params)
    return out[:B, :out_dim]


def init_params(key, in_dim, out_dim, hidden_dim, num_layers):
    """Deterministic init mirroring nn.Linear default (uniform +-1/sqrt(fan_in)).

    Weights are (fan_in, fan_out) == transpose of PyTorch's (out, in).
    """
    dims = [in_dim] + [hidden_dim] * (num_layers - 1) + [out_dim]
    weights, biases = [], []
    for i in range(num_layers):
        fan_in, fan_out = dims[i], dims[i + 1]
        key, wk, bk = jax.random.split(key, 3)
        bound = 1.0 / (fan_in ** 0.5)
        w = jax.random.uniform(wk, (fan_in, fan_out), jnp.float32, -bound, bound)
        b = jax.random.uniform(bk, (1, fan_out), jnp.float32, -bound, bound)
        weights.append(w)
        biases.append(b)
    return weights, biases


def mlp_dense_ref(x, weights, biases):
    h = x
    for w, b in zip(weights[:-1], biases[:-1]):
        h = jnp.maximum(h @ w + b, 0.0)
    return h @ weights[-1] + biases[-1]


if __name__ == "__main__":
    # MLP_dense(in_dim=16, out_dim=8, hidden_dim=128, num_layers=5)
    # Batch 512 -> two 256-row tiles (keeps both v7x TensorCores busy).
    B, in_dim, out_dim, hidden_dim, num_layers = 512, 16, 8, 128, 5

    key = jax.random.PRNGKey(0)
    key, xk = jax.random.split(key)
    x = jax.random.normal(xk, (B, in_dim), jnp.float32)
    weights, biases = init_params(key, in_dim, out_dim, hidden_dim, num_layers)

    ref = mlp_dense_ref(x, weights, biases)

    # f32 path: bit-faithful to the module's f32 forward.
    out_f32 = jax.block_until_ready(
        mlp_dense_pallas(x, weights, biases, tile_m=256, param_dtype=jnp.float32))
    assert out_f32.shape == (B, out_dim)
    assert jnp.allclose(out_f32, ref, atol=1e-4, rtol=1e-4), "f32 kernel mismatch"

    # Default bf16-operand path (v6e/v7x MXU) with f32 accumulation.
    out_bf16 = jax.block_until_ready(mlp_dense_pallas(x, weights, biases))
    assert out_bf16.shape == (B, out_dim)
    assert jnp.allclose(out_bf16, ref, atol=1e-2, rtol=2e-2), "bf16 kernel drift too large"

    print("KERNEL_OK")
</pallas_src>

<mosaic_0001>
module attributes {stable_mosaic.version = 11 : i64} {
  func.func @_mlp_kernel(%arg0: i32, %arg1: memref<256x16xf32, #tpu.memory_space<vmem>>, %arg2: memref<16x128xf32, #tpu.memory_space<vmem>>, %arg3: memref<1x128xf32, #tpu.memory_space<vmem>>, %arg4: memref<128x128xf32, #tpu.memory_space<vmem>>, %arg5: memref<1x128xf32, #tpu.memory_space<vmem>>, %arg6: memref<128x128xf32, #tpu.memory_space<vmem>>, %arg7: memref<1x128xf32, #tpu.memory_space<vmem>>, %arg8: memref<128x128xf32, #tpu.memory_space<vmem>>, %arg9: memref<1x128xf32, #tpu.memory_space<vmem>>, %arg10: memref<128x128xf32, #tpu.memory_space<vmem>>, %arg11: memref<1x128xf32, #tpu.memory_space<vmem>>, %arg12: memref<256x128xf32, #tpu.memory_space<vmem>>) attributes {dimension_semantics = [#tpu.dimension_semantics<parallel>], iteration_bounds = array<i64: 2>, scalar_prefetch = 0 : i64, scratch_operands = 0 : i64, tpu.core_type = #tpu.core_type<tc>, window_params = [{transform_indices = @transform_0, window_bounds = array<i64: 256, 16>}, {pipeline_mode = #tpu.pipeline_mode<synchronous>, transform_indices = @transform_1, window_bounds = array<i64: 16, 128>}, {pipeline_mode = #tpu.pipeline_mode<synchronous>, transform_indices = @transform_2, window_bounds = array<i64: 1, 128>}, {pipeline_mode = #tpu.pipeline_mode<synchronous>, transform_indices = @transform_3, window_bounds = array<i64: 128, 128>}, {pipeline_mode = #tpu.pipeline_mode<synchronous>, transform_indices = @transform_4, window_bounds = array<i64: 1, 128>}, {pipeline_mode = #tpu.pipeline_mode<synchronous>, transform_indices = @transform_5, window_bounds = array<i64: 128, 128>}, {pipeline_mode = #tpu.pipeline_mode<synchronous>, transform_indices = @transform_6, window_bounds = array<i64: 1, 128>}, {pipeline_mode = #tpu.pipeline_mode<synchronous>, transform_indices = @transform_7, window_bounds = array<i64: 128, 128>}, {pipeline_mode = #tpu.pipeline_mode<synchronous>, transform_indices = @transform_8, window_bounds = array<i64: 1, 128>}, {pipeline_mode = #tpu.pipeline_mode<synchronous>, transform_indices = @transform_9, window_bounds = array<i64: 128, 128>}, {pipeline_mode = #tpu.pipeline_mode<synchronous>, transform_indices = @transform_10, window_bounds = array<i64: 1, 128>}, {transform_indices = @transform_11, window_bounds = array<i64: 256, 128>}]} {
    %c0 = arith.constant 0 : index
    %c0_0 = arith.constant 0 : index
    %0 = vector.load %arg1[%c0, %c0_0] : memref<256x16xf32, #tpu.memory_space<vmem>>, vector<256x16xf32>
    %c0_1 = arith.constant 0 : index
    %c0_2 = arith.constant 0 : index
    %1 = vector.load %arg2[%c0_1, %c0_2] : memref<16x128xf32, #tpu.memory_space<vmem>>, vector<16x128xf32>
    %cst = arith.constant dense<0.000000e+00> : vector<256x128xf32>
    %2 = tpu.matmul %0, %1, %cst {dimension_numbers = #tpu.dot_dimension_numbers<[1], [0], [0], [1], [0, 0, 1, 1], [], []>} : vector<256x16xf32>, vector<16x128xf32>, vector<256x128xf32> -> vector<256x128xf32>
    %c0_3 = arith.constant 0 : index
    %c0_4 = arith.constant 0 : index
    %3 = vector.load %arg3[%c0_3, %c0_4] : memref<1x128xf32, #tpu.memory_space<vmem>>, vector<1x128xf32>
    %4 = vector.broadcast %3 : vector<1x128xf32> to vector<256x128xf32>
    %5 = arith.addf %2, %4 : vector<256x128xf32>
    %cst_5 = arith.constant 0.000000e+00 : f32
    %6 = vector.broadcast %cst_5 : f32 to vector<256x128xf32>
    %7 = arith.maximumf %5, %6 : vector<256x128xf32>
    %c0_6 = arith.constant 0 : index
    %c0_7 = arith.constant 0 : index
    %8 = vector.load %arg4[%c0_6, %c0_7] : memref<128x128xf32, #tpu.memory_space<vmem>>, vector<128x128xf32>
    %cst_8 = arith.constant dense<0.000000e+00> : vector<256x128xf32>
    %9 = tpu.matmul %7, %8, %cst_8 {dimension_numbers = #tpu.dot_dimension_numbers<[1], [0], [0], [1], [0, 0, 1, 1], [], []>} : vector<256x128xf32>, vector<128x128xf32>, vector<256x128xf32> -> vector<256x128xf32>
    %c0_9 = arith.constant 0 : index
    %c0_10 = arith.constant 0 : index
    %10 = vector.load %arg5[%c0_9, %c0_10] : memref<1x128xf32, #tpu.memory_space<vmem>>, vector<1x128xf32>
    %11 = vector.broadcast %10 : vector<1x128xf32> to vector<256x128xf32>
    %12 = arith.addf %9, %11 : vector<256x128xf32>
    %cst_11 = arith.constant 0.000000e+00 : f32
    %13 = vector.broadcast %cst_11 : f32 to vector<256x128xf32>
    %14 = arith.maximumf %12, %13 : vector<256x128xf32>
    %c0_12 = arith.constant 0 : index
    %c0_13 = arith.constant 0 : index
    %15 = vector.load %arg6[%c0_12, %c0_13] : memref<128x128xf32, #tpu.memory_space<vmem>>, vector<128x128xf32>
    %cst_14 = arith.constant dense<0.000000e+00> : vector<256x128xf32>
    %16 = tpu.matmul %14, %15, %cst_14 {dimension_numbers = #tpu.dot_dimension_numbers<[1], [0], [0], [1], [0, 0, 1, 1], [], []>} : vector<256x128xf32>, vector<128x128xf32>, vector<256x128xf32> -> vector<256x128xf32>
    %c0_15 = arith.constant 0 : index
    %c0_16 = arith.constant 0 : index
    %17 = vector.load %arg7[%c0_15, %c0_16] : memref<1x128xf32, #tpu.memory_space<vmem>>, vector<1x128xf32>
    %18 = vector.broadcast %17 : vector<1x128xf32> to vector<256x128xf32>
    %19 = arith.addf %16, %18 : vector<256x128xf32>
    %cst_17 = arith.constant 0.000000e+00 : f32
    %20 = vector.broadcast %cst_17 : f32 to vector<256x128xf32>
    %21 = arith.maximumf %19, %20 : vector<256x128xf32>
    %c0_18 = arith.constant 0 : index
    %c0_19 = arith.constant 0 : index
    %22 = vector.load %arg8[%c0_18, %c0_19] : memref<128x128xf32, #tpu.memory_space<vmem>>, vector<128x128xf32>
    %cst_20 = arith.constant dense<0.000000e+00> : vector<256x128xf32>
    %23 = tpu.matmul %21, %22, %cst_20 {dimension_numbers = #tpu.dot_dimension_numbers<[1], [0], [0], [1], [0, 0, 1, 1], [], []>} : vector<256x128xf32>, vector<128x128xf32>, vector<256x128xf32> -> vector<256x128xf32>
    %c0_21 = arith.constant 0 : index
    %c0_22 = arith.constant 0 : index
    %24 = vector.load %arg9[%c0_21, %c0_22] : memref<1x128xf32, #tpu.memory_space<vmem>>, vector<1x128xf32>
    %25 = vector.broadcast %24 : vector<1x128xf32> to vector<256x128xf32>
    %26 = arith.addf %23, %25 : vector<256x128xf32>
    %cst_23 = arith.constant 0.000000e+00 : f32
    %27 = vector.broadcast %cst_23 : f32 to vector<256x128xf32>
    %28 = arith.maximumf %26, %27 : vector<256x128xf32>
    %c0_24 = arith.constant 0 : index
    %c0_25 = arith.constant 0 : index
    %29 = vector.load %arg10[%c0_24, %c0_25] : memref<128x128xf32, #tpu.memory_space<vmem>>, vector<128x128xf32>
    %cst_26 = arith.constant dense<0.000000e+00> : vector<256x128xf32>
    %30 = tpu.matmul %28, %29, %cst_26 {dimension_numbers = #tpu.dot_dimension_numbers<[1], [0], [0], [1], [0, 0, 1, 1], [], []>} : vector<256x128xf32>, vector<128x128xf32>, vector<256x128xf32> -> vector<256x128xf32>
    %c0_27 = arith.constant 0 : index
    %c0_28 = arith.constant 0 : index
    %31 = vector.load %arg11[%c0_27, %c0_28] : memref<1x128xf32, #tpu.memory_space<vmem>>, vector<1x128xf32>
    %32 = vector.broadcast %31 : vector<1x128xf32> to vector<256x128xf32>
    %33 = arith.addf %30, %32 : vector<256x128xf32>
    %c0_29 = arith.constant 0 : index
    %c0_30 = arith.constant 0 : index
    %34 = vector.load %arg12[%c0_29, %c0_30] : memref<256x128xf32, #tpu.memory_space<vmem>>, vector<256x128xf32>
    tpu.vector_store %arg12[%c0_29, %c0_30], %33 {strides = array<i32>} : memref<256x128xf32, #tpu.memory_space<vmem>>, vector<256x128xf32>,
    return
  }
  func.func @transform_0(%arg0: i32) -> (i32, i32) {
    %c0_i32 = arith.constant 0 : i32
    %c0_i32_0 = arith.constant 0 : i32
    return %arg0, %c0_i32 : i32, i32
  }
  func.func @transform_1(%arg0: i32) -> (i32, i32) {
    %c0_i32 = arith.constant 0 : i32
    %c0_i32_0 = arith.constant 0 : i32
    %c0_i32_1 = arith.constant 0 : i32
    return %c0_i32, %c0_i32_0 : i32, i32
  }
  func.func @transform_2(%arg0: i32) -> (i32, i32) {
    %c0_i32 = arith.constant 0 : i32
    %c0_i32_0 = arith.constant 0 : i32
    %c0_i32_1 = arith.constant 0 : i32
    return %c0_i32, %c0_i32_0 : i32, i32
  }
  func.func @transform_3(%arg0: i32) -> (i32, i32) {
    %c0_i32 = arith.constant 0 : i32
    %c0_i32_0 = arith.constant 0 : i32
    %c0_i32_1 = arith.constant 0 : i32
    return %c0_i32, %c0_i32_0 : i32, i32
  }
  func.func @transform_4(%arg0: i32) -> (i32, i32) {
    %c0_i32 = arith.constant 0 : i32
    %c0_i32_0 = arith.constant 0 : i32
    %c0_i32_1 = arith.constant 0 : i32
    return %c0_i32, %c0_i32_0 : i32, i32
  }
  func.func @transform_5(%arg0: i32) -> (i32, i32) {
    %c0_i32 = arith.constant 0 : i32
    %c0_i32_0 = arith.constant 0 : i32
    %c0_i32_1 = arith.constant 0 : i32
    return %c0_i32, %c0_i32_0 : i32, i32
  }
  func.func @transform_6(%arg0: i32) -> (i32, i32) {
    %c0_i32 = arith.constant 0 : i32
    %c0_i32_0 = arith.constant 0 : i32
    %c0_i32_1 = arith.constant 0 : i32
    return %c0_i32, %c0_i32_0 : i32, i32
  }
  func.func @transform_7(%arg0: i32) -> (i32, i32) {
    %c0_i32 = arith.constant 0 : i32
    %c0_i32_0 = arith.constant 0 : i32
    %c0_i32_1 = arith.constant 0 : i32
    return %c0_i32, %c0_i32_0 : i32, i32
  }
  func.func @transform_8(%arg0: i32) -> (i32, i32) {
    %c0_i32 = arith.constant 0 : i32
    %c0_i32_0 = arith.constant 0 : i32
    %c0_i32_1 = arith.constant 0 : i32
    return %c0_i32, %c0_i32_0 : i32, i32
  }
  func.func @transform_9(%arg0: i32) -> (i32, i32) {
    %c0_i32 = arith.constant 0 : i32
    %c0_i32_0 = arith.constant 0 : i32
    %c0_i32_1 = arith.constant 0 : i32
    return %c0_i32, %c0_i32_0 : i32, i32
  }
  func.func @transform_10(%arg0: i32) -> (i32, i32) {
    %c0_i32 = arith.constant 0 : i32
    %c0_i32_0 = arith.constant 0 : i32
    %c0_i32_1 = arith.constant 0 : i32
    return %c0_i32, %c0_i32_0 : i32, i32
  }
  func.func @transform_11(%arg0: i32) -> (i32, i32) {
    %c0_i32 = arith.constant 0 : i32
    %c0_i32_0 = arith.constant 0 : i32
    return %arg0, %c0_i32 : i32, i32
  }
}

</mosaic_0001>

<bundles_post_ra>
// kernel: tpu_custom_call.1
= control target key start
LH: loop header
LB: loop body
LE: loop exit
PB: predicated region body
PF: predicated region fallthrough
CT: control target
= control target key end

     0   :  { %16 = vsyncpa [#allocation3], 0  ;;  %s3528_s0 = inlined_call_operand.vmem [shape: f32[512,16], index: 0, kind: input, shape index: {}]   ;;  %s3529_s1 = inlined_call_operand.vmem [shape: f32[16,128], index: 1, kind: input, shape index: {}]   ;;  %s3530_s2 = inlined_call_operand.vmem [shape: f32[1,128], index: 2, kind: input, shape index: {}]   ;;  %s3531_s3 = inlined_call_operand.vmem [shape: f32[128,128], index: 3, kind: input, shape index: {}]   ;;  %s3532_s4 = inlined_call_operand.vmem [shape: f32[1,128], index: 4, kind: input, shape index: {}]   ;;  %s3533_s5 = inlined_call_operand.vmem [shape: f32[128,128], index: 5, kind: input, shape index: {}]   ;;  %s3534_s6 = inlined_call_operand.vmem [shape: f32[1,128], index: 6, kind: input, shape index: {}]   ;;  %s3535_s7 = inlined_call_operand.vmem [shape: f32[128,128], index: 7, kind: input, shape index: {}]   ;;  %s3536_s8 = inlined_call_operand.vmem [shape: f32[1,128], index: 8, kind: input, shape index: {}]   ;;  %s3537_s9 = inlined_call_operand.vmem [shape: f32[128,128], index: 9, kind: input, shape index: {}]   ;;  %s3538_s10 = inlined_call_operand.vmem [shape: f32[1,128], index: 10, kind: input, shape index: {}]   ;;  %s3539_s11 = inlined_call_operand.hbm [shape: f32[512,128], index: 11, kind: output, shape index: {}]  }
   0x1   :  { %18 = vsyncpa [#allocation3 + $0x1], 0  ;;  %s2929_s17 = smov 0   ;;  %s2931_s18 = smov 0  }
   0x2   :  { %s2933_s19 = smov 0   ;;  %s2935_s20 = smov 0  }
   0x3 LB: > { %s2950_s21 = sadd.s32 4294967295, %s2864_s20   ;;  %s1979_s22 = sadd.s32 4294967294, %s2864_s20   ;;  %s2864_s20 = sphi %s2935_s20, %s3545_s20   ;;  %s2860_s19 = sphi %s2933_s19, %s3544_s19   ;;  %s2856_s18 = sphi %s2931_s18, %s3543_s18   ;;  %s2852_s17 = sphi %s2929_s17, %s3542_s17  }
   0x4   : > { %s2954_s23 = sadd.s32 1, %s2864_s20   ;;  %s267_s24 = sadd.s32 1, %s2860_s19 }
   0x5   : > { %s264_s25 = ssub.s32 %s2864_s20, %s2954_s23  ;;  %p277_p0 = scmp.ne.s32.totalorder %s2860_s19, %s2856_s18 }
   0x6   : > { %p265_p1 = scmp.eq.s32.totalorder %s264_s25, 0  ;;  %p278_p2 = scmp.eq.s32.totalorder %s2950_s21, 1 }
   0x7   : > { %p283_p3 = scmp.ne.s32.totalorder %s2856_s18, %s2852_s17  ;;  %p284_p4 = scmp.eq.s32.totalorder %s1979_s22, 1 }
   0x8   : > { %s2965_s26 = scalar_select %p265_p1, %s2860_s19, %s267_s24  }
   0x9   : > { %p2967_p5 = por %p278_p2, %p277_p0  ;;  %p2971_p6 = por %p284_p4, %p283_p3 }
   0xa   : > { %p1982_p7 = scmp.ge.s32.totalorder %s2864_s20, 1  ;;  %p341_p8 = scmp.lt.s32.totalorder %s2864_s20, 3 }
   0xc   : > { %p342_p9 = pnand %p1982_p7, %p341_p8 }
   0xd   : > { %v420_v0 = vld [vmem:[%s3529_s1] sm:$0xff] (!%p342_p9)  ;;  %v421_v1 = vld [vmem:[%s3529_s1 + $0x8] sm:$0xff] (!%p342_p9)  ;;  %s1984_s14 = sshll.u32 (!%p342_p9), %s2950_s21, 5  ;;  %vm429_vm0 = vcmask (!%p342_p9), 130048   ;;  %v785_v9 = vld [vmem:[%s3531_s3 + $0x10] sm:$0xff] (!%p342_p9)  ;;  %s378_s22 = sand.u32 (!%p342_p9), 1, %s2856_s18  }
   0xe   : > { %345 = sbr.rel (%p342_p9) target bundleno = 1188 (0x4a4), region = 64  ;;  %v783_v2 = vld [vmem:[%s3531_s3] sm:$0xff] (!%p342_p9)  ;;  %v2627_v3 = vpack.c.bf16 (!%p342_p9), %v421_v1, %v420_v0  ;;  %p382_p10 = scmp.lt.s32.totalorder (!%p342_p9), %s1984_s14, 63  ;;  %v784_v4 = vld [vmem:[%s3531_s3 + $0x8] sm:$0xff] (!%p342_p9)  ;;  %v786_v10 = vld [vmem:[%s3531_s3 + $0x18] sm:$0xff] (!%p342_p9) }
   0xf   : > { %v2631_v5 = vpack.c.bf16 (!%p342_p9), %v784_v4, %v783_v2  ;;  %v2635_v15 = vpack.c.bf16 (!%p342_p9), %v786_v10, %v785_v9  ;;  %v787_v17 = vld [vmem:[%s3531_s3 + $0x20] sm:$0xff] (!%p342_p9)  ;;  %v788_v18 = vld [vmem:[%s3531_s3 + $0x28] sm:$0xff] (!%p342_p9)  ;;  %v789_v24 = vld [vmem:[%s3531_s3 + $0x30] sm:$0xff] (!%p342_p9)  ;;  %s1983_s24 = sshll.u32 (!%p342_p9), %s378_s22, 8  ;;  %s2028_s13 = sshll.u32 (!%p342_p9), %s2950_s21, 12 }
  0x10   : > { %2628 = vmatprep.subr.bf16.mxu0 (!%p342_p9), %v2627_v3  ;;  %2759 = vmatprep.subr.bf16.mxu1 (!%p342_p9), %v2627_v3  ;;  %v2639_v23 = vpack.c.bf16 (!%p342_p9), %v788_v18, %v787_v17  ;;  %v790_v25 = vld [vmem:[%s3531_s3 + $0x38] sm:$0xff] (!%p342_p9)  ;;  %v791_v31 = vld [vmem:[%s3531_s3 + $0x40] sm:$0xff] (!%p342_p9)  ;;  %v792_v32 = vld [vmem:[%s3531_s3 + $0x48] sm:$0xff] (!%p342_p9)  ;;  %s3412_s30 = scalar_lea.vmem (!%p342_p9), [#allocation2], %s1983_s24  ;;  %s3487_s21 = scalar_lea.sflag (!%p342_p9), [#allocation3], %s378_s22 }
  0x11   : > { %2630 = vmatpush3.bf16.msra.mxu0 (!%p342_p9), %v2627_v3  ;;  %2760 = vmatpush3.bf16.msra.mxu1 (!%p342_p9), %v2627_v3  ;;  %v2643_v30 = vpack.c.bf16 (!%p342_p9), %v790_v25, %v789_v24  ;;  %v2647_v37 = vpack.c.bf16 (!%p342_p9), %v792_v32, %v791_v31  ;;  %v793_v38 = vld [vmem:[%s3531_s3 + $0x50] sm:$0xff] (!%p342_p9)  ;;  %v794_v39 = vld [vmem:[%s3531_s3 + $0x58] sm:$0xff] (!%p342_p9)  ;;  %v795_v45 = vld [vmem:[%s3531_s3 + $0x60] sm:$0xff] (!%p342_p9) }
  0x12   : > { %2632 = vmatprep.subr.bf16.mxu1 (!%p342_p9), %v2631_v5  ;;  %v2651_v44 = vpack.c.bf16 (!%p342_p9), %v794_v39, %v793_v38  ;;  %v796_v46 = vld [vmem:[%s3531_s3 + $0x68] sm:$0xff] (!%p342_p9)  ;;  %v797_v56 = vld [vmem:[%s3531_s3 + $0x70] sm:$0xff] (!%p342_p9)  ;;  %v798_v57 = vld [vmem:[%s3531_s3 + $0x78] sm:$0xff] (!%p342_p9) }
  0x13   : > { %v2655_v51 = vpack.c.bf16 (!%p342_p9), %v796_v46, %v795_v45  ;;  %v2659_v58 = vpack.c.bf16 (!%p342_p9), %v798_v57, %v797_v56  ;;  %v1063_v59 = vld [vmem:[%s3533_s5] sm:$0xff] (!%p342_p9)  ;;  %v1064_v60 = vld [vmem:[%s3533_s5 + $0x8] sm:$0xff] (!%p342_p9)  ;;  %v1065_v61 = vld [vmem:[%s3533_s5 + $0x10] sm:$0xff] (!%p342_p9) }
  0x14   : > { %v2663_v62 = vpack.c.bf16 (!%p342_p9), %v1064_v60, %v1063_v59  ;;  %v1066_v63 = vld [vmem:[%s3533_s5 + $0x18] sm:$0xff] (!%p342_p9)  ;;  %v1067_v1 = vld [vmem:[%s3533_s5 + $0x20] sm:$0xff] (!%p342_p9)  ;;  %v1068_v2 = vld [vmem:[%s3533_s5 + $0x28] sm:$0xff] (!%p342_p9) }
  0x15   : > { %s3547_s14 = smov (!%p382_p10, %s1984_s14), 63  ;;  %v2667_v0 = vpack.c.bf16 %v1066_v63, %v1065_v61  ;;  %v2671_v3 = vpack.c.bf16 %v1068_v2, %v1067_v1  ;;  %v1069_v4 = vld [vmem:[%s3533_s5 + $0x30] sm:$0xff] }
  0x16   : > { %s1985_s25 = sshll.u32 %s3547_s14, 3  ;;  %2664 = vmatprep.subr.bf16.mxu0 %v2663_v62  ;;  %v1073_v10 = vld [vmem:[%s3533_s5 + $0x50] sm:$0xff]  ;;  %s1917_s14 = sshll.u32 %s3412_s30, 4  ;;  %s3480_s14 = int_to_ptr.vmem [resolvable:$true] %s1917_s14 }
  0x17   : > { %s2993_s12 = scalar_lea.vmem %s3528_s0, %s1985_s25  ;;  %s2802_s24 = scalar_lea.vmem %s3480_s14, 4096 }
  0x18   : > { %v388_v6 = vld [vmem:[%s2993_s12] sm:$0xff]  ;;  %v389_v7 = vld [vmem:[%s2993_s12 + $0x8] sm:$0xff]  ;;  %v390_v8 = vld [vmem:[%s2993_s12 + $0x10] sm:$0xff]  ;;  %p2803_p11 = scmp.ne.s32.totalorder %s3480_s14, %s2802_s24  ;;  %s2866_s25 = smov [#allocation2]  }
  0x19   : > { %2259 = vmatprep.mubr.msk.f32.mxu0 %vm429_vm0, %v388_v6  ;;  %v391_v11 = vld [vmem:[%s2993_s12 + $0x18] sm:$0xff]  ;;  %v392_v12 = vld [vmem:[%s2993_s12 + $0x20] sm:$0xff]  ;;  %v405_v14 = vld [vmem:[%s2993_s12 + $0x88] sm:$0xff]  ;;  %s2806_s29 = sshll.u32 %s2866_s25, 4  ;;  %s2807_s29 = int_to_ptr.vmem [resolvable:$false] %s2806_s29 }
  0x1a   : > { %2260 = vmatmul.mubr.msk.f32.vlgmr.msra.gmra.mrb[0].mxu0 %vm429_vm0, %v389_v7  ;;  %v404_v13 = vld [vmem:[%s2993_s12 + $0x80] sm:$0xff]  ;;  %v406_v16 = vld [vmem:[%s2993_s12 + $0x90] sm:$0xff]  ;;  %v393_v19 = vld [vmem:[%s2993_s12 + $0x28] sm:$0xff]  ;;  %p2804_p12 = pnand %p2803_p11, %p2967_p5  ;;  %p2809_p0 = scmp.lt.s32.totalorder %s3480_s14, %s2807_s29 }
  0x1b   : > { %2262 = vmatprep.mubr.msk.f32.mxu0 %vm429_vm0, %v390_v8  ;;  %2283 = vmatprep.mubr.msk.f32.mxu1 %vm429_vm0, %v404_v13  ;;  %v394_v20 = vld [vmem:[%s2993_s12 + $0x30] sm:$0xff]  ;;  %v407_v21 = vld [vmem:[%s2993_s12 + $0x98] sm:$0xff]  ;;  %v408_v22 = vld [vmem:[%s2993_s12 + $0xa0] sm:$0xff] }
  0x1c   : > { %2284 = vmatmul.mubr.msk.f32.vlgmr.msra.gmra.mrb[0].mxu1 %vm429_vm0, %v405_v14  ;;  %v395_v26 = vld [vmem:[%s2993_s12 + $0x38] sm:$0xff]  ;;  %v396_v27 = vld [vmem:[%s2993_s12 + $0x40] sm:$0xff]  ;;  %v409_v28 = vld [vmem:[%s2993_s12 + $0xa8] sm:$0xff]  ;;  %2666 = vmatpush3.bf16.msra.mxu0 %v2663_v62  ;;  %p2805_p13 = pneg %p2804_p12 }
  0x1d   : > { %2286 = vmatprep.mubr.msk.f32.mxu1 %vm429_vm0, %v406_v16  ;;  %2634 = vmatpush3.bf16.msra.mxu1 %v2631_v5  ;;  %v410_v29 = vld [vmem:[%s2993_s12 + $0xb0] sm:$0xff]  ;;  %v397_v33 = vld [vmem:[%s2993_s12 + $0x48] sm:$0xff]  ;;  %v411_v35 = vld [vmem:[%s2993_s12 + $0xb8] sm:$0xff] }
  0x1e   : > { %2263 = vmatmul.mubr.msk.f32.gmra.mrb[2].mxu0 %vm429_vm0, %v391_v11  ;;  %2636 = vmatprep.subr.bf16.mxu1 %v2635_v15  ;;  %v398_v34 = vld [vmem:[%s2993_s12 + $0x50] sm:$0xff]  ;;  %v412_v36 = vld [vmem:[%s2993_s12 + $0xc0] sm:$0xff]  ;;  %v399_v40 = vld [vmem:[%s2993_s12 + $0x58] sm:$0xff] }
  0x1f   : > { %2265 = vmatprep.mubr.msk.f32.mxu0 %vm429_vm0, %v392_v12  ;;  %v400_v41 = vld [vmem:[%s2993_s12 + $0x60] sm:$0xff]  ;;  %v413_v42 = vld [vmem:[%s2993_s12 + $0xc8] sm:$0xff]  ;;  %v414_v43 = vld [vmem:[%s2993_s12 + $0xd0] sm:$0xff]  ;;  %2668 = vmatprep.subr.bf16.mxu0 %v2667_v0 }
  0x20   : > { %2287 = vmatmul.mubr.msk.f32.gmra.mrb[2].mxu1 %vm429_vm0, %v407_v21  ;;  %v401_v47 = vld [vmem:[%s2993_s12 + $0x68] sm:$0xff]  ;;  %v402_v48 = vld [vmem:[%s2993_s12 + $0x70] sm:$0xff]  ;;  %v415_v49 = vld [vmem:[%s2993_s12 + $0xd8] sm:$0xff]  ;;  %2670 = vmatpush3.bf16.msra.mxu0 %v2667_v0 }
  0x21   : > { %2289 = vmatprep.mubr.msk.f32.mxu1 %vm429_vm0, %v408_v22  ;;  %2638 = vmatpush3.bf16.msra.mxu1 %v2635_v15  ;;  %v416_v50 = vld [vmem:[%s2993_s12 + $0xe0] sm:$0xff]  ;;  %v403_v52 = vld [vmem:[%s2993_s12 + $0x78] sm:$0xff]  ;;  %v417_v53 = vld [vmem:[%s2993_s12 + $0xe8] sm:$0xff] }
  0x22   : > { %2266 = vmatmul.mubr.msk.f32.gmra.mrb[4].mxu0 %vm429_vm0, %v393_v19  ;;  %2640 = vmatprep.subr.bf16.mxu1 %v2639_v23  ;;  %v418_v54 = vld [vmem:[%s2993_s12 + $0xf0] sm:$0xff]  ;;  %v419_v55 = vld [vmem:[%s2993_s12 + $0xf8] sm:$0xff]  ;;  %v1071_v7 = vld [vmem:[%s3533_s5 + $0x40] sm:$0xff]  ;;  %s3478_s12 = scalar_lea.hbm %s3539_s11, %s2028_s13  ;;  %s2808_s13 = scalar_lea.vmem %s2807_s29, 8192 }
  0x23   : > { %2268 = vmatprep.mubr.msk.f32.mxu0 %vm429_vm0, %v394_v20  ;;  %v1070_v5 = vld [vmem:[%s3533_s5 + $0x38] sm:$0xff]  ;;  %2672 = vmatprep.subr.bf16.mxu0 %v2671_v3  ;;  %v1072_v8 = vld [vmem:[%s3533_s5 + $0x48] sm:$0xff]  ;;  %v1075_v13 = vld [vmem:[%s3533_s5 + $0x60] sm:$0xff]  ;;  %p2810_p1 = scmp.lt.s32.totalorder %s2808_s13, %s2802_s24 }
  0x24   : > { %2290 = vmatmul.mubr.msk.f32.gmra.mrb[4].mxu1 %vm429_vm0, %v409_v28  ;;  %v2675_v6 = vpack.c.bf16 %v1070_v5, %v1069_v4  ;;  %2674 = vmatpush3.bf16.msra.mxu0 %v2671_v3  ;;  %v2679_v9 = vpack.c.bf16 %v1072_v8, %v1071_v7  ;;  %v1074_v11 = vld [vmem:[%s3533_s5 + $0x58] sm:$0xff]  ;;  %v1076_v14 = vld [vmem:[%s3533_s5 + $0x68] sm:$0xff]  ;;  %v3146_v16 = vld [vmem:[%s3530_s2] ss:$0 sm:$0xff] }
  0x25   : > { %2292 = vmatprep.mubr.msk.f32.mxu1 %vm429_vm0, %v410_v29  ;;  %2642 = vmatpush3.bf16.msra.mxu1 %v2639_v23  ;;  %v2683_v12 = vpack.c.bf16 %v1074_v11, %v1073_v10  ;;  %v2687_v15 = vpack.c.bf16 %v1076_v14, %v1075_v13  ;;  %p2811_p2 = por %p2810_p1, %p2809_p0 }
  0x26   : > { %2269 = vmatmul.mubr.msk.f32.gmra.mrb[6].mxu0 %vm429_vm0, %v395_v26  ;;  %2644 = vmatprep.subr.bf16.mxu1 %v2643_v30 }
  0x27   : > { %2271 = vmatprep.mubr.msk.f32.mxu0 %vm429_vm0, %v396_v27  ;;  %2676 = vmatprep.subr.bf16.mxu0 %v2675_v6  ;;  %p2812_p3 = pnand %p2811_p2, %p2805_p13 }
  0x28   : > { %2293 = vmatmul.mubr.msk.f32.gmra.mrb[6].mxu1 %vm429_vm0, %v411_v35  ;;  %2678 = vmatpush3.bf16.msra.mxu0 %v2675_v6 }
  0x29   : > { %2295 = vmatprep.mubr.msk.f32.mxu1 %vm429_vm0, %v412_v36  ;;  %2646 = vmatpush3.bf16.msra.mxu1 %v2643_v30 }
  0x2a   : > { %2272 = vmatmul.mubr.msk.f32.gmra.mrb[8].mxu0 %vm429_vm0, %v397_v33  ;;  %2648 = vmatprep.subr.bf16.mxu1 %v2647_v37 }
  0x2b   : > { %2274 = vmatprep.mubr.msk.f32.mxu0 %vm429_vm0, %v398_v34  ;;  %2680 = vmatprep.subr.bf16.mxu0 %v2679_v9 }
  0x2c   : > { %2296 = vmatmul.mubr.msk.f32.gmra.mrb[8].mxu1 %vm429_vm0, %v413_v42  ;;  %2682 = vmatpush3.bf16.msra.mxu0 %v2679_v9 }
  0x2d   : > { %2298 = vmatprep.mubr.msk.f32.mxu1 %vm429_vm0, %v414_v43  ;;  %2650 = vmatpush3.bf16.msra.mxu1 %v2647_v37 }
  0x2e   : > { %2275 = vmatmul.mubr.msk.f32.gmra.mrb[10].mxu0 %vm429_vm0, %v399_v40  ;;  %2652 = vmatprep.subr.bf16.mxu1 %v2651_v44 }
  0x2f   : > { %2277 = vmatprep.mubr.msk.f32.mxu0 %vm429_vm0, %v400_v41  ;;  %2684 = vmatprep.subr.bf16.mxu0 %v2683_v12 }
  0x30   : > { %2299 = vmatmul.mubr.msk.f32.gmra.mrb[10].mxu1 %vm429_vm0, %v415_v49  ;;  %2686 = vmatpush3.bf16.msra.mxu0 %v2683_v12 }
  0x31   : > { %2301 = vmatprep.mubr.msk.f32.mxu1 %vm429_vm0, %v416_v50  ;;  %2654 = vmatpush3.bf16.msra.mxu1 %v2651_v44 }
  0x32   : > { %2278 = vmatmul.mubr.msk.f32.gmra.mrb[12].mxu0 %vm429_vm0, %v401_v47  ;;  %2656 = vmatprep.subr.bf16.mxu1 %v2655_v51 }
  0x33   : > { %2280 = vmatprep.mubr.msk.f32.mxu0 %vm429_vm0, %v402_v48  ;;  %2688 = vmatprep.subr.bf16.mxu0 %v2687_v15 }
  0x34   : > { %2302 = vmatmul.mubr.msk.f32.gmra.mrb[12].mxu1 %vm429_vm0, %v417_v53  ;;  %2690 = vmatpush3.bf16.msra.mxu0 %v2687_v15 }
  0x35   : > { %2304 = vmatprep.mubr.msk.f32.mxu1 %vm429_vm0, %v418_v54  ;;  %2658 = vmatpush3.bf16.msra.mxu1 %v2655_v51 }
  0x36   : > { %2281 = vmatmul.mubr.msk.f32.gmra.mrb[14].mxu0 %vm429_vm0, %v403_v52  ;;  %2660 = vmatprep.subr.bf16.mxu1 %v2659_v58 }
  0x38   : > { %2305 = vmatmul.mubr.msk.f32.gmra.mrb[14].mxu1 %vm429_vm0, %v419_v55 }
  0x39   : > { %2662 = vmatpush3.bf16.msra.mxu1 %v2659_v58 }
  0xed   : > { %v2261_v17 = vpop.f32.mrb[0].mxu0 }
  0xee   : > { %v598_v18 = vadd.f32 %v2261_v17, %v3146_v16  ;;  %v592_v19 = vpop.f32.mrb[1].mxu0 }
  0xef   : > { %v593_v20 = vadd.f32 %v3146_v16, %v592_v19  ;;  %v3151_v26 = vpop.f32.mrb[0].mxu1 }
  0xf0   : > { %v752_v23 = vmax.f32 %v598_v18, 0.0  ;;  %v672_v28 = vpop.f32.mrb[1].mxu1  ;;  %v678_v19 = vadd.f32 %v3151_v26, %v3146_v16 }
  0xf1   : > { %v751_v21 = vmax.f32 %v593_v20, 0.0  ;;  %v2264_v22 = vpop.f32.mrb[2].mxu0  ;;  %v673_v7 = vadd.f32 %v3146_v16, %v672_v28 }
  0xf2   : > { %v608_v24 = vadd.f32 %v2264_v22, %v3146_v16  ;;  %v602_v25 = vpop.f32.mrb[3].mxu0 }
  0xf3   : > { %v603_v27 = vadd.f32 %v3146_v16, %v602_v25  ;;  %2339 = vmatprep.mubr.f32.mxu1 %v751_v21  ;;  %v3155_v34 = vpop.f32.mrb[2].mxu1  ;;  %v767_v15 = vmax.f32 %v673_v7, 0.0  ;;  %v1356_v7 = vld [vmem:[%s3535_s7 + $0x68] sm:$0xff] }
  0xf4   : > { %2340 = vmatmul.mubr.f32.vlgmr.msra.gmra.mrb[16].mxu1 %v752_v23  ;;  %v754_v31 = vmax.f32 %v608_v24, 0.0  ;;  %v682_v36 = vpop.f32.mrb[3].mxu1  ;;  %v768_v24 = vmax.f32 %v678_v19, 0.0  ;;  %v688_v25 = vadd.f32 %v3155_v34, %v3146_v16 }
  0xf5   : > { %v753_v29 = vmax.f32 %v603_v27, 0.0  ;;  %v2267_v30 = vpop.f32.mrb[4].mxu0  ;;  %v683_v17 = vadd.f32 %v3146_v16, %v682_v36 }
  0xf6   : > { %v618_v32 = vadd.f32 %v2267_v30, %v3146_v16  ;;  %v612_v33 = vpop.f32.mrb[5].mxu0 }
  0xf7   : > { %v613_v35 = vadd.f32 %v3146_v16, %v612_v33  ;;  %2342 = vmatprep.mubr.f32.mxu1 %v753_v29  ;;  %v3159_v42 = vpop.f32.mrb[4].mxu1  ;;  %v769_v22 = vmax.f32 %v683_v17, 0.0  ;;  %v770_v29 = vmax.f32 %v688_v25, 0.0 }
  0xf8   : > { %2343 = vmatmul.mubr.f32.gmra.mrb[18].mxu1 %v754_v31  ;;  %v756_v39 = vmax.f32 %v618_v32, 0.0  ;;  %v692_v44 = vpop.f32.mrb[5].mxu1  ;;  %v698_v26 = vadd.f32 %v3159_v42, %v3146_v16 }
  0xf9   : > { %v755_v37 = vmax.f32 %v613_v35, 0.0  ;;  %v2270_v38 = vpop.f32.mrb[6].mxu0  ;;  %v693_v23 = vadd.f32 %v3146_v16, %v692_v44 }
  0xfa   : > { %v628_v40 = vadd.f32 %v2270_v38, %v3146_v16  ;;  %v622_v41 = vpop.f32.mrb[7].mxu0  ;;  %v772_v32 = vmax.f32 %v698_v26, 0.0 }
  0xfb   : > { %v623_v43 = vadd.f32 %v3146_v16, %v622_v41  ;;  %2345 = vmatprep.mubr.f32.mxu1 %v755_v37  ;;  %v2294_v50 = vpop.f32.mrb[6].mxu1  ;;  %v771_v27 = vmax.f32 %v693_v23, 0.0 }
  0xfc   : > { %2346 = vmatmul.mubr.f32.gmra.mrb[20].mxu1 %v756_v39  ;;  %v758_v47 = vmax.f32 %v628_v40, 0.0  ;;  %v702_v52 = vpop.f32.mrb[7].mxu1  ;;  %v708_v33 = vadd.f32 %v2294_v50, %v3146_v16  ;;  %v1077_v50 = vld [vmem:[%s3533_s5 + $0x70] sm:$0xff] }
  0xfd   : > { %v757_v45 = vmax.f32 %v623_v43, 0.0  ;;  %v2273_v46 = vpop.f32.mrb[8].mxu0  ;;  %v703_v28 = vadd.f32 %v3146_v16, %v702_v52 }
  0xfe   : > { %v638_v48 = vadd.f32 %v2273_v46, %v3146_v16  ;;  %v632_v49 = vpop.f32.mrb[9].mxu0  ;;  %v774_v36 = vmax.f32 %v708_v33, 0.0 }
  0xff   : > { %v633_v51 = vadd.f32 %v3146_v16, %v632_v49  ;;  %2348 = vmatprep.mubr.f32.mxu1 %v757_v45  ;;  %v2297_v58 = vpop.f32.mrb[8].mxu1  ;;  %v773_v30 = vmax.f32 %v703_v28, 0.0 }
 0x100   : > { %2349 = vmatmul.mubr.f32.gmra.mrb[22].mxu1 %v758_v47  ;;  %v760_v55 = vmax.f32 %v638_v48, 0.0  ;;  %v712_v60 = vpop.f32.mrb[9].mxu1  ;;  %v718_v37 = vadd.f32 %v2297_v58, %v3146_v16  ;;  %v1347_v58 = vld [vmem:[%s3535_s7 + $0x20] sm:$0xff] }
 0x101   : > { %v759_v53 = vmax.f32 %v633_v51, 0.0  ;;  %v2276_v54 = vpop.f32.mrb[10].mxu0  ;;  %v713_v31 = vadd.f32 %v3146_v16, %v712_v60  ;;  %v1078_v51 = vld [vmem:[%s3533_s5 + $0x78] sm:$0xff] }
 0x102   : > { %v648_v56 = vadd.f32 %v2276_v54, %v3146_v16  ;;  %v642_v57 = vpop.f32.mrb[11].mxu0  ;;  %v776_v40 = vmax.f32 %v718_v37, 0.0  ;;  %v2691_v52 = vpack.c.bf16 %v1078_v51, %v1077_v50  ;;  %v1345_v54 = vld [vmem:[%s3535_s7 + $0x10] sm:$0xff] }
 0x103   : > { %v643_v59 = vadd.f32 %v3146_v16, %v642_v57  ;;  %2351 = vmatprep.mubr.f32.mxu1 %v759_v53  ;;  %v2300_v2 = vpop.f32.mrb[10].mxu1  ;;  %v775_v35 = vmax.f32 %v713_v31, 0.0  ;;  %v1343_v53 = vld [vmem:[%s3535_s7] sm:$0xff] }
 0x104   : > { %2352 = vmatmul.mubr.f32.gmra.mrb[24].mxu1 %v760_v55  ;;  %v762_v63 = vmax.f32 %v648_v56, 0.0  ;;  %v722_v4 = vpop.f32.mrb[11].mxu1  ;;  %v728_v41 = vadd.f32 %v2300_v2, %v3146_v16  ;;  %2692 = vmatprep.subr.bf16.mxu0 %v2691_v52  ;;  %v1346_v56 = vld [vmem:[%s3535_s7 + $0x18] sm:$0xff] }
 0x105   : > { %v761_v61 = vmax.f32 %v643_v59, 0.0  ;;  %v2279_v62 = vpop.f32.mrb[12].mxu0  ;;  %v723_v34 = vadd.f32 %v3146_v16, %v722_v4  ;;  %2694 = vmatpush3.bf16.msra.mxu0 %v2691_v52  ;;  %v2699_v57 = vpack.c.bf16 %v1346_v56, %v1345_v54  ;;  %v1348_v59 = vld [vmem:[%s3535_s7 + $0x28] sm:$0xff]  ;;  %v1354_v4 = vld [vmem:[%s3535_s7 + $0x58] sm:$0xff] }
 0x106   : > { %v658_v0 = vadd.f32 %v2279_v62, %v3146_v16  ;;  %v652_v1 = vpop.f32.mrb[13].mxu0  ;;  %v778_v44 = vmax.f32 %v728_v41, 0.0  ;;  %v2703_v60 = vpack.c.bf16 %v1348_v59, %v1347_v58  ;;  %v1350_v62 = vld [vmem:[%s3535_s7 + $0x38] sm:$0xff] }
 0x107   : > { %v653_v3 = vadd.f32 %v3146_v16, %v652_v1  ;;  %2354 = vmatprep.mubr.f32.mxu1 %v761_v61  ;;  %v2303_v11 = vpop.f32.mrb[12].mxu1  ;;  %v777_v38 = vmax.f32 %v723_v34, 0.0  ;;  %v1349_v61 = vld [vmem:[%s3535_s7 + $0x30] sm:$0xff]  ;;  %v1352_v1 = vld [vmem:[%s3535_s7 + $0x48] sm:$0xff] }
 0x108   : > { %2355 = vmatmul.mubr.f32.gmra.mrb[26].mxu1 %v762_v63  ;;  %v764_v8 = vmax.f32 %v658_v0, 0.0  ;;  %v732_v13 = vpop.f32.mrb[13].mxu1  ;;  %v738_v45 = vadd.f32 %v2303_v11, %v3146_v16  ;;  %v2707_v63 = vpack.c.bf16 %v1350_v62, %v1349_v61  ;;  %v1351_v0 = vld [vmem:[%s3535_s7 + $0x40] sm:$0xff] }
 0x109   : > { %v763_v5 = vmax.f32 %v653_v3, 0.0  ;;  %v2282_v6 = vpop.f32.mrb[14].mxu0  ;;  %v733_v39 = vadd.f32 %v3146_v16, %v732_v13  ;;  %v2711_v2 = vpack.c.bf16 %v1352_v1, %v1351_v0  ;;  %v1353_v3 = vld [vmem:[%s3535_s7 + $0x50] sm:$0xff] }
 0x10a   : > { %v668_v9 = vadd.f32 %v2282_v6, %v3146_v16  ;;  %v662_v10 = vpop.f32.mrb[15].mxu0  ;;  %v780_v47 = vmax.f32 %v738_v45, 0.0  ;;  %v1355_v6 = vld [vmem:[%s3535_s7 + $0x60] sm:$0xff] }
 0x10b   : > { %v663_v12 = vadd.f32 %v3146_v16, %v662_v10  ;;  %2357 = vmatprep.mubr.f32.mxu1 %v763_v5  ;;  %v2306_v20 = vpop.f32.mrb[14].mxu1  ;;  %v779_v42 = vmax.f32 %v733_v39, 0.0  ;;  %v2715_v5 = vpack.c.bf16 %v1354_v4, %v1353_v3  ;;  %v1358_v10 = vld [vmem:[%s3535_s7 + $0x78] sm:$0xff] }
 0x10c   : > { %2358 = vmatmul.mubr.f32.gmra.mrb[28].mxu1 %v764_v8  ;;  %v766_v18 = vmax.f32 %v668_v9, 0.0  ;;  %v742_v21 = vpop.f32.mrb[15].mxu1  ;;  %v748_v48 = vadd.f32 %v2306_v20, %v3146_v16  ;;  %v2719_v8 = vpack.c.bf16 %v1356_v7, %v1355_v6  ;;  %v1357_v9 = vld [vmem:[%s3535_s7 + $0x70] sm:$0xff] }
 0x10d   : > { %v765_v14 = vmax.f32 %v663_v12, 0.0  ;;  %v743_v43 = vadd.f32 %v3146_v16, %v742_v21  ;;  %v1344_v16 = vld [vmem:[%s3535_s7 + $0x8] sm:$0xff]  ;;  %v2723_v11 = vpack.c.bf16 %v1358_v10, %v1357_v9  ;;  %v3246_v12 = vld [vmem:[%s3532_s4] ss:$0 sm:$0xff] }
 0x10e   : > { %v782_v49 = vmax.f32 %v748_v48, 0.0  ;;  %v2695_v55 = vpack.c.bf16 %v1344_v16, %v1343_v53 }
 0x10f   : > { %2360 = vmatprep.mubr.f32.mxu1 %v765_v14  ;;  %v781_v46 = vmax.f32 %v743_v43, 0.0 }
 0x110   : > { %2361 = vmatmul.mubr.f32.gmra.mrb[30].mxu1 %v766_v18  ;;  %2696 = vmatprep.subr.bf16.mxu1 %v2695_v55 }
 0x111   : > { %2363 = vmatprep.mubr.f32.mxu1 %v767_v15  ;;  %2698 = vmatpush3.bf16.msra.mxu1 %v2695_v55 }
 0x112   : > { %2700 = vmatprep.subr.bf16.mxu1 %v2699_v57 }
 0x114   : > { %2364 = vmatmul.mubr.f32.gmra.mrb[32].mxu1 %v768_v24 }
 0x115   : > { %2366 = vmatprep.mubr.f32.mxu1 %v769_v22  ;;  %2702 = vmatpush3.bf16.msra.mxu1 %v2699_v57 }
 0x116   : > { %2704 = vmatprep.subr.bf16.mxu1 %v2703_v60 }
 0x118   : > { %2367 = vmatmul.mubr.f32.gmra.mrb[34].mxu1 %v770_v29 }
 0x119   : > { %2369 = vmatprep.mubr.f32.mxu1 %v771_v27  ;;  %2706 = vmatpush3.bf16.msra.mxu1 %v2703_v60 }
 0x11a   : > { %2708 = vmatprep.subr.bf16.mxu1 %v2707_v63 }
 0x11c   : > { %2370 = vmatmul.mubr.f32.gmra.mrb[36].mxu1 %v772_v32 }
 0x11d   : > { %2372 = vmatprep.mubr.f32.mxu1 %v773_v30  ;;  %2710 = vmatpush3.bf16.msra.mxu1 %v2707_v63 }
 0x11e   : > { %2712 = vmatprep.subr.bf16.mxu1 %v2711_v2 }
 0x120   : > { %2373 = vmatmul.mubr.f32.gmra.mrb[38].mxu1 %v774_v36 }
 0x121   : > { %2375 = vmatprep.mubr.f32.mxu1 %v775_v35  ;;  %2714 = vmatpush3.bf16.msra.mxu1 %v2711_v2 }
 0x122   : > { %2716 = vmatprep.subr.bf16.mxu1 %v2715_v5 }
 0x124   : > { %2376 = vmatmul.mubr.f32.gmra.mrb[40].mxu1 %v776_v40 }
 0x125   : > { %2378 = vmatprep.mubr.f32.mxu1 %v777_v38  ;;  %2718 = vmatpush3.bf16.msra.mxu1 %v2715_v5 }
 0x126   : > { %2720 = vmatprep.subr.bf16.mxu1 %v2719_v8 }
 0x128   : > { %2379 = vmatmul.mubr.f32.gmra.mrb[42].mxu1 %v778_v44 }
 0x129   : > { %2381 = vmatprep.mubr.f32.mxu1 %v779_v42  ;;  %2722 = vmatpush3.bf16.msra.mxu1 %v2719_v8 }
 0x12a   : > { %2724 = vmatprep.subr.bf16.mxu1 %v2723_v11 }
 0x12c   : > { %2382 = vmatmul.mubr.f32.gmra.mrb[44].mxu1 %v780_v47 }
 0x12d   : > { %2384 = vmatprep.mubr.f32.mxu1 %v781_v46  ;;  %2726 = vmatpush3.bf16.msra.mxu1 %v2723_v11 }
 0x130   : > { %2385 = vmatmul.mubr.f32.gmra.mrb[46].mxu1 %v782_v49 }
 0x1c7   : > { %v2341_v13 = vpop.f32.mrb[16].mxu1 }
 0x1c8   : > { %v878_v14 = vadd.f32 %v2341_v13, %v3246_v12  ;;  %v872_v15 = vpop.f32.mrb[17].mxu1 }
 0x1c9   : > { %v873_v17 = vadd.f32 %v3246_v12, %v872_v15 }
 0x1ca   : > { %v1032_v20 = vmax.f32 %v878_v14, 0.0 }
 0x1cb   : > { %v1031_v18 = vmax.f32 %v873_v17, 0.0  ;;  %v2344_v19 = vpop.f32.mrb[18].mxu1 }
 0x1cc   : > { %v888_v21 = vadd.f32 %v2344_v19, %v3246_v12  ;;  %v882_v22 = vpop.f32.mrb[19].mxu1 }
 0x1cd   : > { %v883_v23 = vadd.f32 %v3246_v12, %v882_v22  ;;  %2419 = vmatprep.mubr.f32.mxu0 %v1031_v18 }
 0x1ce   : > { %2420 = vmatmul.mubr.f32.vlgmr.msra.gmra.mrb[16].mxu0 %v1032_v20  ;;  %v1034_v27 = vmax.f32 %v888_v21, 0.0 }
 0x1cf   : > { %v1033_v24 = vmax.f32 %v883_v23, 0.0  ;;  %v2347_v25 = vpop.f32.mrb[20].mxu1 }
 0x1d0   : > { %v898_v28 = vadd.f32 %v2347_v25, %v3246_v12  ;;  %v892_v29 = vpop.f32.mrb[21].mxu1 }
 0x1d1   : > { %v893_v26 = vadd.f32 %v3246_v12, %v892_v29  ;;  %2422 = vmatprep.mubr.f32.mxu0 %v1033_v24 }
 0x1d2   : > { %2423 = vmatmul.mubr.f32.gmra.mrb[18].mxu0 %v1034_v27  ;;  %v1036_v32 = vmax.f32 %v898_v28, 0.0 }
 0x1d3   : > { %v1035_v30 = vmax.f32 %v893_v26, 0.0  ;;  %v2350_v31 = vpop.f32.mrb[22].mxu1 }
 0x1d4   : > { %v908_v33 = vadd.f32 %v2350_v31, %v3246_v12  ;;  %v902_v35 = vpop.f32.mrb[23].mxu1 }
 0x1d5   : > { %v903_v34 = vadd.f32 %v3246_v12, %v902_v35  ;;  %2425 = vmatprep.mubr.f32.mxu0 %v1035_v30 }
 0x1d6   : > { %2426 = vmatmul.mubr.f32.gmra.mrb[20].mxu0 %v1036_v32  ;;  %v1038_v38 = vmax.f32 %v908_v33, 0.0 }
 0x1d7   : > { %v1037_v36 = vmax.f32 %v903_v34, 0.0  ;;  %v2353_v37 = vpop.f32.mrb[24].mxu1 }
 0x1d8   : > { %v918_v39 = vadd.f32 %v2353_v37, %v3246_v12  ;;  %v912_v40 = vpop.f32.mrb[25].mxu1 }
 0x1d9   : > { %v913_v41 = vadd.f32 %v3246_v12, %v912_v40  ;;  %2428 = vmatprep.mubr.f32.mxu0 %v1037_v36 }
 0x1da   : > { %2429 = vmatmul.mubr.f32.gmra.mrb[22].mxu0 %v1038_v38  ;;  %v1040_v44 = vmax.f32 %v918_v39, 0.0 }
 0x1db   : > { %v1039_v42 = vmax.f32 %v913_v41, 0.0  ;;  %v2356_v43 = vpop.f32.mrb[26].mxu1 }
 0x1dc   : > { %v928_v45 = vadd.f32 %v2356_v43, %v3246_v12  ;;  %v922_v46 = vpop.f32.mrb[27].mxu1 }
 0x1dd   : > { %v923_v47 = vadd.f32 %v3246_v12, %v922_v46  ;;  %2431 = vmatprep.mubr.f32.mxu0 %v1039_v42 }
 0x1de   : > { %2432 = vmatmul.mubr.f32.gmra.mrb[24].mxu0 %v1040_v44  ;;  %v1042_v50 = vmax.f32 %v928_v45, 0.0 }
 0x1df   : > { %v1041_v48 = vmax.f32 %v923_v47, 0.0  ;;  %v2359_v49 = vpop.f32.mrb[28].mxu1  ;;  %v1623_v47 = vld [vmem:[%s3537_s9] sm:$0xff] }
 0x1e0   : > { %v938_v51 = vadd.f32 %v2359_v49, %v3246_v12  ;;  %v932_v52 = vpop.f32.mrb[29].mxu1  ;;  %v1625_v49 = vld [vmem:[%s3537_s9 + $0x10] sm:$0xff] }
 0x1e1   : > { %v933_v53 = vadd.f32 %v3246_v12, %v932_v52  ;;  %2434 = vmatprep.mubr.f32.mxu0 %v1041_v48  ;;  %v1624_v48 = vld [vmem:[%s3537_s9 + $0x8] sm:$0xff]  ;;  %v1627_v52 = vld [vmem:[%s3537_s9 + $0x20] sm:$0xff] }
 0x1e2   : > { %2435 = vmatmul.mubr.f32.gmra.mrb[26].mxu0 %v1042_v50  ;;  %v1044_v55 = vmax.f32 %v938_v51, 0.0  ;;  %v2727_v50 = vpack.c.bf16 %v1624_v48, %v1623_v47 }
 0x1e3   : > { %v1043_v16 = vmax.f32 %v933_v53, 0.0  ;;  %v2362_v54 = vpop.f32.mrb[30].mxu1  ;;  %v1628_v53 = vld [vmem:[%s3537_s9 + $0x28] sm:$0xff] }
 0x1e4   : > { %v948_v56 = vadd.f32 %v2362_v54, %v3246_v12  ;;  %v942_v57 = vpop.f32.mrb[31].mxu1  ;;  %2728 = vmatprep.subr.bf16.mxu0 %v2727_v50  ;;  %v1629_v54 = vld [vmem:[%s3537_s9 + $0x30] sm:$0xff] }
 0x1e5   : > { %v943_v58 = vadd.f32 %v3246_v12, %v942_v57  ;;  %2437 = vmatprep.mubr.f32.mxu0 %v1043_v16  ;;  %2730 = vmatpush3.bf16.msra.mxu0 %v2727_v50  ;;  %v2735_v16 = vpack.c.bf16 %v1628_v53, %v1627_v52  ;;  %v1631_v57 = vld [vmem:[%s3537_s9 + $0x40] sm:$0xff] }
 0x1e6   : > { %2438 = vmatmul.mubr.f32.gmra.mrb[28].mxu0 %v1044_v55  ;;  %v1046_v61 = vmax.f32 %v948_v56, 0.0  ;;  %v1630_v55 = vld [vmem:[%s3537_s9 + $0x38] sm:$0xff] }
 0x1e7   : > { %v1045_v59 = vmax.f32 %v943_v58, 0.0  ;;  %v2365_v60 = vpop.f32.mrb[32].mxu1  ;;  %v2739_v56 = vpack.c.bf16 %v1630_v55, %v1629_v54  ;;  %v1632_v58 = vld [vmem:[%s3537_s9 + $0x48] sm:$0xff] }
 0x1e8   : > { %v958_v62 = vadd.f32 %v2365_v60, %v3246_v12  ;;  %v952_v63 = vpop.f32.mrb[33].mxu1  ;;  %v1633_v60 = vld [vmem:[%s3537_s9 + $0x50] sm:$0xff] }
 0x1e9   : > { %v953_v0 = vadd.f32 %v3246_v12, %v952_v63  ;;  %2440 = vmatprep.mubr.f32.mxu0 %v1045_v59  ;;  %v2743_v59 = vpack.c.bf16 %v1632_v58, %v1631_v57  ;;  %v1635_v63 = vld [vmem:[%s3537_s9 + $0x60] sm:$0xff] }
 0x1ea   : > { %2441 = vmatmul.mubr.f32.gmra.mrb[30].mxu0 %v1046_v61  ;;  %v1048_v3 = vmax.f32 %v958_v62, 0.0  ;;  %v1634_v61 = vld [vmem:[%s3537_s9 + $0x58] sm:$0xff] }
 0x1eb   : > { %v1047_v1 = vmax.f32 %v953_v0, 0.0  ;;  %v2368_v2 = vpop.f32.mrb[34].mxu1  ;;  %v2747_v62 = vpack.c.bf16 %v1634_v61, %v1633_v60  ;;  %v1636_v0 = vld [vmem:[%s3537_s9 + $0x68] sm:$0xff] }
 0x1ec   : > { %v968_v4 = vadd.f32 %v2368_v2, %v3246_v12  ;;  %v962_v5 = vpop.f32.mrb[35].mxu1  ;;  %v1637_v2 = vld [vmem:[%s3537_s9 + $0x70] sm:$0xff] }
 0x1ed   : > { %v963_v6 = vadd.f32 %v3246_v12, %v962_v5  ;;  %2443 = vmatprep.mubr.f32.mxu0 %v1047_v1  ;;  %v2751_v1 = vpack.c.bf16 %v1636_v0, %v1635_v63  ;;  %v3331_v5 = vld [vmem:[%s3534_s6] ss:$0 sm:$0xff] }
 0x1ee   : > { %2444 = vmatmul.mubr.f32.gmra.mrb[32].mxu0 %v1048_v3  ;;  %v1050_v9 = vmax.f32 %v968_v4, 0.0  ;;  %v1638_v3 = vld [vmem:[%s3537_s9 + $0x78] sm:$0xff] }
 0x1ef   : > { %v1049_v7 = vmax.f32 %v963_v6, 0.0  ;;  %v2371_v8 = vpop.f32.mrb[36].mxu1  ;;  %v2755_v4 = vpack.c.bf16 %v1638_v3, %v1637_v2 }
 0x1f0   : > { %v978_v10 = vadd.f32 %v2371_v8, %v3246_v12  ;;  %v972_v11 = vpop.f32.mrb[37].mxu1 }
 0x1f1   : > { %v973_v13 = vadd.f32 %v3246_v12, %v972_v11  ;;  %2446 = vmatprep.mubr.f32.mxu0 %v1049_v7 }
 0x1f2   : > { %2447 = vmatmul.mubr.f32.gmra.mrb[34].mxu0 %v1050_v9  ;;  %v1052_v17 = vmax.f32 %v978_v10, 0.0 }
 0x1f3   : > { %v1051_v14 = vmax.f32 %v973_v13, 0.0  ;;  %v2374_v15 = vpop.f32.mrb[38].mxu1 }
 0x1f4   : > { %v988_v18 = vadd.f32 %v2374_v15, %v3246_v12  ;;  %v982_v19 = vpop.f32.mrb[39].mxu1 }
 0x1f5   : > { %v983_v20 = vadd.f32 %v3246_v12, %v982_v19  ;;  %2449 = vmatprep.mubr.f32.mxu0 %v1051_v14 }
 0x1f6   : > { %2450 = vmatmul.mubr.f32.gmra.mrb[36].mxu0 %v1052_v17  ;;  %v1054_v23 = vmax.f32 %v988_v18, 0.0 }
 0x1f7   : > { %v1053_v21 = vmax.f32 %v983_v20, 0.0  ;;  %v2377_v22 = vpop.f32.mrb[40].mxu1 }
 0x1f8   : > { %v998_v24 = vadd.f32 %v2377_v22, %v3246_v12  ;;  %v992_v25 = vpop.f32.mrb[41].mxu1 }
 0x1f9   : > { %v993_v27 = vadd.f32 %v3246_v12, %v992_v25  ;;  %2452 = vmatprep.mubr.f32.mxu0 %v1053_v21 }
 0x1fa   : > { %2453 = vmatmul.mubr.f32.gmra.mrb[38].mxu0 %v1054_v23  ;;  %v1056_v26 = vmax.f32 %v998_v24, 0.0 }
 0x1fb   : > { %v1055_v28 = vmax.f32 %v993_v27, 0.0  ;;  %v2380_v29 = vpop.f32.mrb[42].mxu1 }
 0x1fc   : > { %v1008_v30 = vadd.f32 %v2380_v29, %v3246_v12  ;;  %v1002_v31 = vpop.f32.mrb[43].mxu1 }
 0x1fd   : > { %v1003_v32 = vadd.f32 %v3246_v12, %v1002_v31  ;;  %2455 = vmatprep.mubr.f32.mxu0 %v1055_v28 }
 0x1fe   : > { %2456 = vmatmul.mubr.f32.gmra.mrb[40].mxu0 %v1056_v26  ;;  %v1058_v34 = vmax.f32 %v1008_v30, 0.0 }
 0x1ff   : > { %v1057_v33 = vmax.f32 %v1003_v32, 0.0  ;;  %v2383_v35 = vpop.f32.mrb[44].mxu1 }
 0x200   : > { %v1018_v36 = vadd.f32 %v2383_v35, %v3246_v12  ;;  %v1012_v37 = vpop.f32.mrb[45].mxu1 }
 0x201   : > { %v1013_v38 = vadd.f32 %v3246_v12, %v1012_v37  ;;  %2458 = vmatprep.mubr.f32.mxu0 %v1057_v33 }
 0x202   : > { %2459 = vmatmul.mubr.f32.gmra.mrb[42].mxu0 %v1058_v34  ;;  %v1060_v41 = vmax.f32 %v1018_v36, 0.0 }
 0x203   : > { %v1059_v39 = vmax.f32 %v1013_v38, 0.0  ;;  %v2386_v40 = vpop.f32.mrb[46].mxu1 }
 0x204   : > { %v1028_v42 = vadd.f32 %v2386_v40, %v3246_v12  ;;  %v1022_v43 = vpop.f32.mrb[47].mxu1 }
 0x205   : > { %v1023_v44 = vadd.f32 %v3246_v12, %v1022_v43  ;;  %2461 = vmatprep.mubr.f32.mxu0 %v1059_v39  ;;  %v1626_v12 = vld [vmem:[%s3537_s9 + $0x18] sm:$0xff] }
 0x206   : > { %2462 = vmatmul.mubr.f32.gmra.mrb[44].mxu0 %v1060_v41  ;;  %v1062_v46 = vmax.f32 %v1028_v42, 0.0  ;;  %v2731_v51 = vpack.c.bf16 %v1626_v12, %v1625_v49 }
 0x207   : > { %v1061_v45 = vmax.f32 %v1023_v44, 0.0 }
 0x208   : > { %2732 = vmatprep.subr.bf16.mxu0 %v2731_v51 }
 0x209   : > { %2464 = vmatprep.mubr.f32.mxu0 %v1061_v45  ;;  %2734 = vmatpush3.bf16.msra.mxu0 %v2731_v51 }
 0x20a   : > { %2465 = vmatmul.mubr.f32.gmra.mrb[46].mxu0 %v1062_v46  ;;  %2736 = vmatprep.subr.bf16.mxu0 %v2735_v16 }
 0x20d   : > { %2738 = vmatpush3.bf16.msra.mxu0 %v2735_v16 }
 0x20e   : > { %2740 = vmatprep.subr.bf16.mxu0 %v2739_v56 }
 0x211   : > { %2742 = vmatpush3.bf16.msra.mxu0 %v2739_v56 }
 0x212   : > { %2744 = vmatprep.subr.bf16.mxu0 %v2743_v59 }
 0x215   : > { %2746 = vmatpush3.bf16.msra.mxu0 %v2743_v59 }
 0x216   : > { %2748 = vmatprep.subr.bf16.mxu0 %v2747_v62 }
 0x219   : > { %2750 = vmatpush3.bf16.msra.mxu0 %v2747_v62 }
 0x21a   : > { %2752 = vmatprep.subr.bf16.mxu0 %v2751_v1 }
 0x21d   : > { %2754 = vmatpush3.bf16.msra.mxu0 %v2751_v1 }
 0x21e   : > { %2756 = vmatprep.subr.bf16.mxu0 %v2755_v4 }
 0x221   : > { %2758 = vmatpush3.bf16.msra.mxu0 %v2755_v4 }
 0x2a1   : > { %v2421_v6 = vpop.f32.mrb[16].mxu0 }
 0x2a2   : > { %v1158_v7 = vadd.f32 %v2421_v6, %v3331_v5  ;;  %v1152_v8 = vpop.f32.mrb[17].mxu0 }
 0x2a3   : > { %v1153_v9 = vadd.f32 %v3331_v5, %v1152_v8 }
 0x2a4   : > { %v1312_v13 = vmax.f32 %v1158_v7, 0.0 }
 0x2a5   : > { %v1311_v10 = vmax.f32 %v1153_v9, 0.0  ;;  %v2424_v11 = vpop.f32.mrb[18].mxu0 }
 0x2a6   : > { %v1168_v14 = vadd.f32 %v2424_v11, %v3331_v5  ;;  %v1162_v15 = vpop.f32.mrb[19].mxu0 }
 0x2a7   : > { %v1163_v17 = vadd.f32 %v3331_v5, %v1162_v15  ;;  %2499 = vmatprep.mubr.f32.mxu1 %v1311_v10 }
 0x2a8   : > { %2500 = vmatmul.mubr.f32.vlgmr.msra.gmra.mrb[48].mxu1 %v1312_v13  ;;  %v1314_v20 = vmax.f32 %v1168_v14, 0.0 }
 0x2a9   : > { %v1313_v18 = vmax.f32 %v1163_v17, 0.0  ;;  %v2427_v19 = vpop.f32.mrb[20].mxu0 }
 0x2aa   : > { %v1178_v21 = vadd.f32 %v2427_v19, %v3331_v5  ;;  %v1172_v22 = vpop.f32.mrb[21].mxu0 }
 0x2ab   : > { %v1173_v23 = vadd.f32 %v3331_v5, %v1172_v22  ;;  %2502 = vmatprep.mubr.f32.mxu1 %v1313_v18 }
 0x2ac   : > { %2503 = vmatmul.mubr.f32.gmra.mrb[50].mxu1 %v1314_v20  ;;  %v1316_v27 = vmax.f32 %v1178_v21, 0.0 }
 0x2ad   : > { %v1315_v24 = vmax.f32 %v1173_v23, 0.0  ;;  %v2430_v25 = vpop.f32.mrb[22].mxu0 }
 0x2ae   : > { %v1188_v28 = vadd.f32 %v2430_v25, %v3331_v5  ;;  %v1182_v29 = vpop.f32.mrb[23].mxu0 }
 0x2af   : > { %v1183_v26 = vadd.f32 %v3331_v5, %v1182_v29  ;;  %2505 = vmatprep.mubr.f32.mxu1 %v1315_v24 }
 0x2b0   : > { %2506 = vmatmul.mubr.f32.gmra.mrb[52].mxu1 %v1316_v27  ;;  %v1318_v32 = vmax.f32 %v1188_v28, 0.0 }
 0x2b1   : > { %v1317_v30 = vmax.f32 %v1183_v26, 0.0  ;;  %v2433_v31 = vpop.f32.mrb[24].mxu0 }
 0x2b2   : > { %v1198_v33 = vadd.f32 %v2433_v31, %v3331_v5  ;;  %v1192_v35 = vpop.f32.mrb[25].mxu0 }
 0x2b3   : > { %v1193_v34 = vadd.f32 %v3331_v5, %v1192_v35  ;;  %2508 = vmatprep.mubr.f32.mxu1 %v1317_v30 }
 0x2b4   : > { %2509 = vmatmul.mubr.f32.gmra.mrb[54].mxu1 %v1318_v32  ;;  %v1320_v38 = vmax.f32 %v1198_v33, 0.0 }
 0x2b5   : > { %v1319_v36 = vmax.f32 %v1193_v34, 0.0  ;;  %v2436_v37 = vpop.f32.mrb[26].mxu0 }
 0x2b6   : > { %v1208_v39 = vadd.f32 %v2436_v37, %v3331_v5  ;;  %v1202_v40 = vpop.f32.mrb[27].mxu0 }
 0x2b7   : > { %v1203_v41 = vadd.f32 %v3331_v5, %v1202_v40  ;;  %2511 = vmatprep.mubr.f32.mxu1 %v1319_v36 }
 0x2b8   : > { %2512 = vmatmul.mubr.f32.gmra.mrb[56].mxu1 %v1320_v38  ;;  %v1322_v44 = vmax.f32 %v1208_v39, 0.0 }
 0x2b9   : > { %v1321_v42 = vmax.f32 %v1203_v41, 0.0  ;;  %v2439_v43 = vpop.f32.mrb[28].mxu0  ;;  %v3368_v41 = vld [vmem:[%s3536_s8] ss:$0 sm:$0xff] }
 0x2ba   : > { %v1218_v45 = vadd.f32 %v2439_v43, %v3331_v5  ;;  %v1212_v46 = vpop.f32.mrb[29].mxu0 }
 0x2bb   : > { %v1213_v47 = vadd.f32 %v3331_v5, %v1212_v46  ;;  %2514 = vmatprep.mubr.f32.mxu1 %v1321_v42 }
 0x2bc   : > { %2515 = vmatmul.mubr.f32.gmra.mrb[58].mxu1 %v1322_v44  ;;  %v1324_v50 = vmax.f32 %v1218_v45, 0.0 }
 0x2bd   : > { %v1323_v48 = vmax.f32 %v1213_v47, 0.0  ;;  %v2442_v49 = vpop.f32.mrb[30].mxu0 }
 0x2be   : > { %v1228_v12 = vadd.f32 %v2442_v49, %v3331_v5  ;;  %v1222_v51 = vpop.f32.mrb[31].mxu0 }
 0x2bf   : > { %v1223_v52 = vadd.f32 %v3331_v5, %v1222_v51  ;;  %2517 = vmatprep.mubr.f32.mxu1 %v1323_v48 }
 0x2c0   : > { %2518 = vmatmul.mubr.f32.gmra.mrb[60].mxu1 %v1324_v50  ;;  %v1326_v54 = vmax.f32 %v1228_v12, 0.0 }
 0x2c1   : > { %v1325_v53 = vmax.f32 %v1223_v52, 0.0  ;;  %v2445_v16 = vpop.f32.mrb[32].mxu0 }
 0x2c2   : > { %v1238_v55 = vadd.f32 %v2445_v16, %v3331_v5  ;;  %v1232_v56 = vpop.f32.mrb[33].mxu0 }
 0x2c3   : > { %v1233_v57 = vadd.f32 %v3331_v5, %v1232_v56  ;;  %2520 = vmatprep.mubr.f32.mxu1 %v1325_v53 }
 0x2c4   : > { %2521 = vmatmul.mubr.f32.gmra.mrb[62].mxu1 %v1326_v54  ;;  %v1328_v60 = vmax.f32 %v1238_v55, 0.0 }
 0x2c5   : > { %v1327_v58 = vmax.f32 %v1233_v57, 0.0  ;;  %v2448_v59 = vpop.f32.mrb[34].mxu0 }
 0x2c6   : > { %v1248_v61 = vadd.f32 %v2448_v59, %v3331_v5  ;;  %v1242_v62 = vpop.f32.mrb[35].mxu0 }
 0x2c7   : > { %v1243_v63 = vadd.f32 %v3331_v5, %v1242_v62  ;;  %2523 = vmatprep.mubr.f32.mxu1 %v1327_v58 }
 0x2c8   : > { %2524 = vmatmul.mubr.f32.gmra.mrb[64].mxu1 %v1328_v60  ;;  %v1330_v2 = vmax.f32 %v1248_v61, 0.0 }
 0x2c9   : > { %v1329_v0 = vmax.f32 %v1243_v63, 0.0  ;;  %v2451_v1 = vpop.f32.mrb[36].mxu0 }
 0x2ca   : > { %v1258_v3 = vadd.f32 %v2451_v1, %v3331_v5  ;;  %v1252_v4 = vpop.f32.mrb[37].mxu0 }
 0x2cb   : > { %v1253_v6 = vadd.f32 %v3331_v5, %v1252_v4  ;;  %2526 = vmatprep.mubr.f32.mxu1 %v1329_v0 }
 0x2cc   : > { %2527 = vmatmul.mubr.f32.gmra.mrb[66].mxu1 %v1330_v2  ;;  %v1332_v9 = vmax.f32 %v1258_v3, 0.0 }
 0x2cd   : > { %v1331_v7 = vmax.f32 %v1253_v6, 0.0  ;;  %v2454_v8 = vpop.f32.mrb[38].mxu0 }
 0x2ce   : > { %v1268_v10 = vadd.f32 %v2454_v8, %v3331_v5  ;;  %v1262_v11 = vpop.f32.mrb[39].mxu0 }
 0x2cf   : > { %v1263_v13 = vadd.f32 %v3331_v5, %v1262_v11  ;;  %2529 = vmatprep.mubr.f32.mxu1 %v1331_v7 }
 0x2d0   : > { %2530 = vmatmul.mubr.f32.gmra.mrb[68].mxu1 %v1332_v9  ;;  %v1334_v17 = vmax.f32 %v1268_v10, 0.0 }
 0x2d1   : > { %v1333_v14 = vmax.f32 %v1263_v13, 0.0  ;;  %v2457_v15 = vpop.f32.mrb[40].mxu0 }
 0x2d2   : > { %v1278_v18 = vadd.f32 %v2457_v15, %v3331_v5  ;;  %v1272_v19 = vpop.f32.mrb[41].mxu0 }
 0x2d3   : > { %v1273_v20 = vadd.f32 %v3331_v5, %v1272_v19  ;;  %2532 = vmatprep.mubr.f32.mxu1 %v1333_v14 }
 0x2d4   : > { %2533 = vmatmul.mubr.f32.gmra.mrb[70].mxu1 %v1334_v17  ;;  %v1336_v23 = vmax.f32 %v1278_v18, 0.0 }
 0x2d5   : > { %v1335_v21 = vmax.f32 %v1273_v20, 0.0  ;;  %v2460_v22 = vpop.f32.mrb[42].mxu0 }
 0x2d6   : > { %v1288_v24 = vadd.f32 %v2460_v22, %v3331_v5  ;;  %v1282_v25 = vpop.f32.mrb[43].mxu0 }
 0x2d7   : > { %v1283_v27 = vadd.f32 %v3331_v5, %v1282_v25  ;;  %2535 = vmatprep.mubr.f32.mxu1 %v1335_v21 }
 0x2d8   : > { %2536 = vmatmul.mubr.f32.gmra.mrb[72].mxu1 %v1336_v23  ;;  %v1338_v26 = vmax.f32 %v1288_v24, 0.0 }
 0x2d9   : > { %v1337_v28 = vmax.f32 %v1283_v27, 0.0  ;;  %v2463_v29 = vpop.f32.mrb[44].mxu0 }
 0x2da   : > { %v1298_v30 = vadd.f32 %v2463_v29, %v3331_v5  ;;  %v1292_v31 = vpop.f32.mrb[45].mxu0 }
 0x2db   : > { %v1293_v32 = vadd.f32 %v3331_v5, %v1292_v31  ;;  %2538 = vmatprep.mubr.f32.mxu1 %v1337_v28 }
 0x2dc   : > { %2539 = vmatmul.mubr.f32.gmra.mrb[74].mxu1 %v1338_v26  ;;  %v1340_v34 = vmax.f32 %v1298_v30, 0.0 }
 0x2dd   : > { %v1339_v33 = vmax.f32 %v1293_v32, 0.0  ;;  %v2466_v35 = vpop.f32.mrb[46].mxu0 }
 0x2de   : > { %v1308_v36 = vadd.f32 %v2466_v35, %v3331_v5  ;;  %v1302_v37 = vpop.f32.mrb[47].mxu0 }
 0x2df   : > { %v1303_v38 = vadd.f32 %v3331_v5, %v1302_v37  ;;  %2541 = vmatprep.mubr.f32.mxu1 %v1339_v33 }
 0x2e0   : > { %2542 = vmatmul.mubr.f32.gmra.mrb[76].mxu1 %v1340_v34  ;;  %v1342_v40 = vmax.f32 %v1308_v36, 0.0 }
 0x2e1   : > { %v1341_v39 = vmax.f32 %v1303_v38, 0.0 }
 0x2e3   : > { %2544 = vmatprep.mubr.f32.mxu1 %v1341_v39 }
 0x2e4   : > { %2545 = vmatmul.mubr.f32.gmra.mrb[78].mxu1 %v1342_v40 }
 0x37b   : > { %v2501_v42 = vpop.f32.mrb[48].mxu1 }
 0x37c   : > { %v1438_v43 = vadd.f32 %v2501_v42, %v3368_v41  ;;  %v1432_v44 = vpop.f32.mrb[49].mxu1 }
 0x37d   : > { %v1433_v45 = vadd.f32 %v3368_v41, %v1432_v44 }
 0x37e   : > { %v1592_v5 = vmax.f32 %v1438_v43, 0.0 }
 0x37f   : > { %v1591_v46 = vmax.f32 %v1433_v45, 0.0  ;;  %v2504_v47 = vpop.f32.mrb[50].mxu1 }
 0x380   : > { %v1448_v48 = vadd.f32 %v2504_v47, %v3368_v41  ;;  %v1442_v49 = vpop.f32.mrb[51].mxu1 }
 0x381   : > { %v1443_v50 = vadd.f32 %v3368_v41, %v1442_v49  ;;  %2579 = vmatprep.mubr.f32.mxu0 %v1591_v46 }
 0x382   : > { %2580 = vmatmul.mubr.f32.vlgmr.msra.gmra.mrb[48].mxu0 %v1592_v5  ;;  %v1594_v52 = vmax.f32 %v1448_v48, 0.0 }
 0x383   : > { %v1593_v12 = vmax.f32 %v1443_v50, 0.0  ;;  %v2507_v51 = vpop.f32.mrb[52].mxu1 }
 0x384   : > { %v1458_v53 = vadd.f32 %v2507_v51, %v3368_v41  ;;  %v1452_v16 = vpop.f32.mrb[53].mxu1 }
 0x385   : > { %v1453_v54 = vadd.f32 %v3368_v41, %v1452_v16  ;;  %2582 = vmatprep.mubr.f32.mxu0 %v1593_v12 }
 0x386   : > { %2583 = vmatmul.mubr.f32.gmra.mrb[50].mxu0 %v1594_v52  ;;  %v1596_v57 = vmax.f32 %v1458_v53, 0.0 }
 0x387   : > { %v1595_v55 = vmax.f32 %v1453_v54, 0.0  ;;  %v2510_v56 = vpop.f32.mrb[54].mxu1 }
 0x388   : > { %v1468_v58 = vadd.f32 %v2510_v56, %v3368_v41  ;;  %v1462_v59 = vpop.f32.mrb[55].mxu1 }
 0x389   : > { %v1463_v60 = vadd.f32 %v3368_v41, %v1462_v59  ;;  %2585 = vmatprep.mubr.f32.mxu0 %v1595_v55 }
 0x38a   : > { %2586 = vmatmul.mubr.f32.gmra.mrb[52].mxu0 %v1596_v57  ;;  %v1598_v63 = vmax.f32 %v1468_v58, 0.0 }
 0x38b   : > { %v1597_v61 = vmax.f32 %v1463_v60, 0.0  ;;  %v2513_v62 = vpop.f32.mrb[56].mxu1 }
 0x38c   : > { %v1478_v0 = vadd.f32 %v2513_v62, %v3368_v41  ;;  %v1472_v1 = vpop.f32.mrb[57].mxu1 }
 0x38d   : > { %v1473_v2 = vadd.f32 %v3368_v41, %v1472_v1  ;;  %2588 = vmatprep.mubr.f32.mxu0 %v1597_v61 }
 0x38e   : > { %2589 = vmatmul.mubr.f32.gmra.mrb[54].mxu0 %v1598_v63  ;;  %v1600_v6 = vmax.f32 %v1478_v0, 0.0 }
 0x38f   : > { %v1599_v3 = vmax.f32 %v1473_v2, 0.0  ;;  %v2516_v4 = vpop.f32.mrb[58].mxu1 }
 0x390   : > { %v1488_v7 = vadd.f32 %v2516_v4, %v3368_v41  ;;  %v1482_v8 = vpop.f32.mrb[59].mxu1 }
 0x391   : > { %v1483_v9 = vadd.f32 %v3368_v41, %v1482_v8  ;;  %2591 = vmatprep.mubr.f32.mxu0 %v1599_v3 }
 0x392   : > { %2592 = vmatmul.mubr.f32.gmra.mrb[56].mxu0 %v1600_v6  ;;  %v1602_v13 = vmax.f32 %v1488_v7, 0.0 }
 0x393   : > { %v1601_v10 = vmax.f32 %v1483_v9, 0.0  ;;  %v2519_v11 = vpop.f32.mrb[60].mxu1  ;;  %v3408_v9 = vld [vmem:[%s3538_s10] ss:$0 sm:$0xff] }
 0x394   : > { %v1498_v14 = vadd.f32 %v2519_v11, %v3368_v41  ;;  %v1492_v15 = vpop.f32.mrb[61].mxu1 }
 0x395   : > { %v1493_v17 = vadd.f32 %v3368_v41, %v1492_v15  ;;  %2594 = vmatprep.mubr.f32.mxu0 %v1601_v10 }
 0x396   : > { %2595 = vmatmul.mubr.f32.gmra.mrb[58].mxu0 %v1602_v13  ;;  %v1604_v20 = vmax.f32 %v1498_v14, 0.0 }
 0x397   : > { %v1603_v18 = vmax.f32 %v1493_v17, 0.0  ;;  %v2522_v19 = vpop.f32.mrb[62].mxu1 }
 0x398   : > { %v1508_v21 = vadd.f32 %v2522_v19, %v3368_v41  ;;  %v1502_v22 = vpop.f32.mrb[63].mxu1 }
 0x399   : > { %v1503_v23 = vadd.f32 %v3368_v41, %v1502_v22  ;;  %2597 = vmatprep.mubr.f32.mxu0 %v1603_v18 }
 0x39a   : > { %2598 = vmatmul.mubr.f32.gmra.mrb[60].mxu0 %v1604_v20  ;;  %v1606_v27 = vmax.f32 %v1508_v21, 0.0 }
 0x39b   : > { %v1605_v24 = vmax.f32 %v1503_v23, 0.0  ;;  %v2525_v25 = vpop.f32.mrb[64].mxu1 }
 0x39c   : > { %v1518_v28 = vadd.f32 %v2525_v25, %v3368_v41  ;;  %v1512_v29 = vpop.f32.mrb[65].mxu1 }
 0x39d   : > { %v1513_v26 = vadd.f32 %v3368_v41, %v1512_v29  ;;  %2600 = vmatprep.mubr.f32.mxu0 %v1605_v24 }
 0x39e   : > { %2601 = vmatmul.mubr.f32.gmra.mrb[62].mxu0 %v1606_v27  ;;  %v1608_v32 = vmax.f32 %v1518_v28, 0.0 }
 0x39f   : > { %v1607_v30 = vmax.f32 %v1513_v26, 0.0  ;;  %v2528_v31 = vpop.f32.mrb[66].mxu1 }
 0x3a0   : > { %v1528_v33 = vadd.f32 %v2528_v31, %v3368_v41  ;;  %v1522_v35 = vpop.f32.mrb[67].mxu1 }
 0x3a1   : > { %v1523_v34 = vadd.f32 %v3368_v41, %v1522_v35  ;;  %2603 = vmatprep.mubr.f32.mxu0 %v1607_v30 }
 0x3a2   : > { %2604 = vmatmul.mubr.f32.gmra.mrb[64].mxu0 %v1608_v32  ;;  %v1610_v38 = vmax.f32 %v1528_v33, 0.0 }
 0x3a3   : > { %v1609_v36 = vmax.f32 %v1523_v34, 0.0  ;;  %v2531_v37 = vpop.f32.mrb[68].mxu1 }
 0x3a4   : > { %v1538_v39 = vadd.f32 %v2531_v37, %v3368_v41  ;;  %v1532_v40 = vpop.f32.mrb[69].mxu1 }
 0x3a5   : > { %v1533_v42 = vadd.f32 %v3368_v41, %v1532_v40  ;;  %2606 = vmatprep.mubr.f32.mxu0 %v1609_v36 }
 0x3a6   : > { %2607 = vmatmul.mubr.f32.gmra.mrb[66].mxu0 %v1610_v38  ;;  %v1612_v45 = vmax.f32 %v1538_v39, 0.0 }
 0x3a7   : > { %v1611_v43 = vmax.f32 %v1533_v42, 0.0  ;;  %v2534_v44 = vpop.f32.mrb[70].mxu1 }
 0x3a8   : > { %v1548_v46 = vadd.f32 %v2534_v44, %v3368_v41  ;;  %v1542_v47 = vpop.f32.mrb[71].mxu1 }
 0x3a9   : > { %v1543_v5 = vadd.f32 %v3368_v41, %v1542_v47  ;;  %2609 = vmatprep.mubr.f32.mxu0 %v1611_v43 }
 0x3aa   : > { %2610 = vmatmul.mubr.f32.gmra.mrb[68].mxu0 %v1612_v45  ;;  %v1614_v50 = vmax.f32 %v1548_v46, 0.0 }
 0x3ab   : > { %v1613_v48 = vmax.f32 %v1543_v5, 0.0  ;;  %v2537_v49 = vpop.f32.mrb[72].mxu1 }
 0x3ac   : > { %v1558_v12 = vadd.f32 %v2537_v49, %v3368_v41  ;;  %v1552_v51 = vpop.f32.mrb[73].mxu1 }
 0x3ad   : > { %v1553_v52 = vadd.f32 %v3368_v41, %v1552_v51  ;;  %2612 = vmatprep.mubr.f32.mxu0 %v1613_v48 }
 0x3ae   : > { %2613 = vmatmul.mubr.f32.gmra.mrb[70].mxu0 %v1614_v50  ;;  %v1616_v54 = vmax.f32 %v1558_v12, 0.0 }
 0x3af   : > { %v1615_v53 = vmax.f32 %v1553_v52, 0.0  ;;  %v2540_v16 = vpop.f32.mrb[74].mxu1 }
 0x3b0   : > { %v1568_v55 = vadd.f32 %v2540_v16, %v3368_v41  ;;  %v1562_v56 = vpop.f32.mrb[75].mxu1 }
 0x3b1   : > { %v1563_v57 = vadd.f32 %v3368_v41, %v1562_v56  ;;  %2615 = vmatprep.mubr.f32.mxu0 %v1615_v53 }
 0x3b2   : > { %2616 = vmatmul.mubr.f32.gmra.mrb[72].mxu0 %v1616_v54  ;;  %v1618_v60 = vmax.f32 %v1568_v55, 0.0 }
 0x3b3   : > { %v1617_v58 = vmax.f32 %v1563_v57, 0.0  ;;  %v2543_v59 = vpop.f32.mrb[76].mxu1 }
 0x3b4   : > { %v1578_v61 = vadd.f32 %v2543_v59, %v3368_v41  ;;  %v1572_v62 = vpop.f32.mrb[77].mxu1 }
 0x3b5   : > { %v1573_v63 = vadd.f32 %v3368_v41, %v1572_v62  ;;  %2618 = vmatprep.mubr.f32.mxu0 %v1617_v58 }
 0x3b6   : > { %2619 = vmatmul.mubr.f32.gmra.mrb[74].mxu0 %v1618_v60  ;;  %v1620_v2 = vmax.f32 %v1578_v61, 0.0 }
 0x3b7   : > { %v1619_v0 = vmax.f32 %v1573_v63, 0.0  ;;  %v2546_v1 = vpop.f32.mrb[78].mxu1 }
 0x3b8   : > { %v1588_v3 = vadd.f32 %v2546_v1, %v3368_v41  ;;  %v1582_v4 = vpop.f32.mrb[79].mxu1 }
 0x3b9   : > { %v1583_v6 = vadd.f32 %v3368_v41, %v1582_v4  ;;  %2621 = vmatprep.mubr.f32.mxu0 %v1619_v0 }
 0x3ba   : > { %2622 = vmatmul.mubr.f32.gmra.mrb[76].mxu0 %v1620_v2  ;;  %v1622_v8 = vmax.f32 %v1588_v3, 0.0 }
 0x3bb   : > { %v1621_v7 = vmax.f32 %v1583_v6, 0.0 }
 0x3bd   : > { %2624 = vmatprep.mubr.f32.mxu0 %v1621_v7 }
 0x3be   : > { %2625 = vmatmul.mubr.f32.gmra.mrb[78].mxu0 %v1622_v8 }
 0x455   : > { %v2581_v10 = vpop.f32.mrb[48].mxu0 }
 0x456   : > { %v1718_v11 = vadd.f32 %v2581_v10, %v3408_v9  ;;  %v1712_v13 = vpop.f32.mrb[49].mxu0 }
 0x457   : > { %v1713_v41 = vadd.f32 %v3408_v9, %v1712_v13 }
 0x458   : > { %1872 = vst [vmem:[%s3412_s30 + $0x8] sm:$0xff] %v1718_v11 }
 0x459   : > { %1871 = vst [vmem:[%s3412_s30] sm:$0xff] %v1713_v41  ;;  %v2584_v14 = vpop.f32.mrb[50].mxu0 }
 0x45a   : > { %v1728_v15 = vadd.f32 %v2584_v14, %v3408_v9  ;;  %v1722_v17 = vpop.f32.mrb[51].mxu0 }
 0x45b   : > { %v1723_v18 = vadd.f32 %v3408_v9, %v1722_v17 }
 0x45c   : > { %1874 = vst [vmem:[%s3412_s30 + $0x18] sm:$0xff] %v1728_v15 }
 0x45d   : > { %1873 = vst [vmem:[%s3412_s30 + $0x10] sm:$0xff] %v1723_v18  ;;  %v2587_v19 = vpop.f32.mrb[52].mxu0 }
 0x45e   : > { %v1738_v20 = vadd.f32 %v2587_v19, %v3408_v9  ;;  %v1732_v21 = vpop.f32.mrb[53].mxu0 }
 0x45f   : > { %v1733_v22 = vadd.f32 %v3408_v9, %v1732_v21 }
 0x460   : > { %1876 = vst [vmem:[%s3412_s30 + $0x28] sm:$0xff] %v1738_v20 }
 0x461   : > { %1875 = vst [vmem:[%s3412_s30 + $0x20] sm:$0xff] %v1733_v22  ;;  %v2590_v23 = vpop.f32.mrb[54].mxu0 }
 0x462   : > { %v1748_v24 = vadd.f32 %v2590_v23, %v3408_v9  ;;  %v1742_v25 = vpop.f32.mrb[55].mxu0 }
 0x463   : > { %v1743_v27 = vadd.f32 %v3408_v9, %v1742_v25 }
 0x464   : > { %1878 = vst [vmem:[%s3412_s30 + $0x38] sm:$0xff] %v1748_v24 }
 0x465   : > { %1877 = vst [vmem:[%s3412_s30 + $0x30] sm:$0xff] %v1743_v27  ;;  %v2593_v28 = vpop.f32.mrb[56].mxu0 }
 0x466   : > { %v1758_v29 = vadd.f32 %v2593_v28, %v3408_v9  ;;  %v1752_v26 = vpop.f32.mrb[57].mxu0 }
 0x467   : > { %v1753_v30 = vadd.f32 %v3408_v9, %v1752_v26 }
 0x468   : > { %1880 = vst [vmem:[%s3412_s30 + $0x48] sm:$0xff] %v1758_v29 }
 0x469   : > { %1879 = vst [vmem:[%s3412_s30 + $0x40] sm:$0xff] %v1753_v30  ;;  %v2596_v31 = vpop.f32.mrb[58].mxu0 }
 0x46a   : > { %v1768_v32 = vadd.f32 %v2596_v31, %v3408_v9  ;;  %v1762_v33 = vpop.f32.mrb[59].mxu0 }
 0x46b   : > { %v1763_v35 = vadd.f32 %v3408_v9, %v1762_v33 }
 0x46c   : > { %1882 = vst [vmem:[%s3412_s30 + $0x58] sm:$0xff] %v1768_v32 }
 0x46d   : > { %1881 = vst [vmem:[%s3412_s30 + $0x50] sm:$0xff] %v1763_v35  ;;  %v2599_v34 = vpop.f32.mrb[60].mxu0 }
 0x46e   : > { %v1778_v36 = vadd.f32 %v2599_v34, %v3408_v9  ;;  %v1772_v37 = vpop.f32.mrb[61].mxu0 }
 0x46f   : > { %v1773_v38 = vadd.f32 %v3408_v9, %v1772_v37 }
 0x470   : > { %1884 = vst [vmem:[%s3412_s30 + $0x68] sm:$0xff] %v1778_v36 }
 0x471   : > { %1883 = vst [vmem:[%s3412_s30 + $0x60] sm:$0xff] %v1773_v38  ;;  %v2602_v39 = vpop.f32.mrb[62].mxu0 }
 0x472   : > { %v1788_v40 = vadd.f32 %v2602_v39, %v3408_v9  ;;  %v1782_v42 = vpop.f32.mrb[63].mxu0 }
 0x473   : > { %v1783_v43 = vadd.f32 %v3408_v9, %v1782_v42 }
 0x474   : > { %1886 = vst [vmem:[%s3412_s30 + $0x78] sm:$0xff] %v1788_v40 }
 0x475   : > { %1885 = vst [vmem:[%s3412_s30 + $0x70] sm:$0xff] %v1783_v43  ;;  %v2605_v44 = vpop.f32.mrb[64].mxu0 }
 0x476   : > { %v1798_v45 = vadd.f32 %v2605_v44, %v3408_v9  ;;  %v1792_v46 = vpop.f32.mrb[65].mxu0 }
 0x477   : > { %v1793_v47 = vadd.f32 %v3408_v9, %v1792_v46 }
 0x478   : > { %1888 = vst [vmem:[%s3412_s30 + $0x88] sm:$0xff] %v1798_v45 }
 0x479   : > { %1887 = vst [vmem:[%s3412_s30 + $0x80] sm:$0xff] %v1793_v47  ;;  %v2608_v5 = vpop.f32.mrb[66].mxu0 }
 0x47a   : > { %v1808_v48 = vadd.f32 %v2608_v5, %v3408_v9  ;;  %v1802_v49 = vpop.f32.mrb[67].mxu0 }
 0x47b   : > { %v1803_v50 = vadd.f32 %v3408_v9, %v1802_v49 }
 0x47c   : > { %1890 = vst [vmem:[%s3412_s30 + $0x98] sm:$0xff] %v1808_v48 }
 0x47d   : > { %1889 = vst [vmem:[%s3412_s30 + $0x90] sm:$0xff] %v1803_v50  ;;  %v2611_v12 = vpop.f32.mrb[68].mxu0 }
 0x47e   : > { %v1818_v51 = vadd.f32 %v2611_v12, %v3408_v9  ;;  %v1812_v52 = vpop.f32.mrb[69].mxu0 }
 0x47f   : > { %v1813_v53 = vadd.f32 %v3408_v9, %v1812_v52 }
 0x480   : > { %1892 = vst [vmem:[%s3412_s30 + $0xa8] sm:$0xff] %v1818_v51 }
 0x481   : > { %1891 = vst [vmem:[%s3412_s30 + $0xa0] sm:$0xff] %v1813_v53  ;;  %v2614_v16 = vpop.f32.mrb[70].mxu0 }
 0x482   : > { %v1828_v54 = vadd.f32 %v2614_v16, %v3408_v9  ;;  %v1822_v55 = vpop.f32.mrb[71].mxu0 }
 0x483   : > { %v1823_v56 = vadd.f32 %v3408_v9, %v1822_v55 }
 0x484   : > { %1894 = vst [vmem:[%s3412_s30 + $0xb8] sm:$0xff] %v1828_v54 }
 0x485   : > { %1893 = vst [vmem:[%s3412_s30 + $0xb0] sm:$0xff] %v1823_v56  ;;  %v2617_v57 = vpop.f32.mrb[72].mxu0 }
 0x486   : > { %v1838_v58 = vadd.f32 %v2617_v57, %v3408_v9  ;;  %v1832_v59 = vpop.f32.mrb[73].mxu0 }
 0x487   : > { %v1833_v60 = vadd.f32 %v3408_v9, %v1832_v59 }
 0x488   : > { %1896 = vst [vmem:[%s3412_s30 + $0xc8] sm:$0xff] %v1838_v58 }
 0x489   : > { %1895 = vst [vmem:[%s3412_s30 + $0xc0] sm:$0xff] %v1833_v60  ;;  %v2620_v61 = vpop.f32.mrb[74].mxu0 }
 0x48a   : > { %v1848_v62 = vadd.f32 %v2620_v61, %v3408_v9  ;;  %v1842_v63 = vpop.f32.mrb[75].mxu0 }
 0x48b   : > { %v1843_v0 = vadd.f32 %v3408_v9, %v1842_v63 }
 0x48c   : > { %1898 = vst [vmem:[%s3412_s30 + $0xd8] sm:$0xff] %v1848_v62 }
 0x48d   : > { %1897 = vst [vmem:[%s3412_s30 + $0xd0] sm:$0xff] %v1843_v0  ;;  %v2623_v1 = vpop.f32.mrb[76].mxu0 }
 0x48e   : > { %v1858_v2 = vadd.f32 %v2623_v1, %v3408_v9  ;;  %v1852_v3 = vpop.f32.mrb[77].mxu0 }
 0x48f   : > { %v1853_v4 = vadd.f32 %v3408_v9, %v1852_v3 }
 0x490   : > { %1900 = vst [vmem:[%s3412_s30 + $0xe8] sm:$0xff] %v1858_v2 }
 0x491   : > { %1899 = vst [vmem:[%s3412_s30 + $0xe0] sm:$0xff] %v1853_v4  ;;  %v2626_v6 = vpop.f32.mrb[78].mxu0 }
 0x492   : > { %v1868_v7 = vadd.f32 %v2626_v6, %v3408_v9  ;;  %v1862_v8 = vpop.f32.mrb[79].mxu0 }
 0x493   : > { %v1863_v10 = vadd.f32 %v3408_v9, %v1862_v8 }
 0x494   : > { %1902 = vst [vmem:[%s3412_s30 + $0xf8] sm:$0xff] %v1868_v7 }
 0x495   : > { %1901 = vst [vmem:[%s3412_s30 + $0xf0] sm:$0xff] %v1863_v10 }
 0x496   : > { %2815 = shalt.err (!%p2812_p3)
}
 0x497   : > { %s2816_s22 = scalar_lea.hbm %s3478_s12, 4096  ;;  %s2820_s16 = scalar_lea.hbm %s3539_s11, 8192 }
 0x498   : > { %p2817_p4 = scmp.ne.s32.totalorder %s3478_s12, %s2816_s22  ;;  %p2821_p9 = scmp.lt.u32.totalorder %s3478_s12, %s3539_s11 }
 0x499   : > { %p2822_p10 = scmp.lt.u32.totalorder %s2820_s16, %s2816_s22  ;;  %p2824_p12 = scmp.lt.u32.totalorder %s2816_s22, %s3478_s12 }
 0x49a   : > { %p2818_p7 = pnand %p2817_p4, %p2967_p5 }
 0x49b   : > { %p2823_p11 = por %p2822_p10, %p2821_p9 }
 0x49c   : > { %p2819_p8 = pneg %p2818_p7 }
 0x49d   : > { %p2825_p13 = por %p2824_p12, %p2823_p11 }
 0x49f   : > { %p2826_p0 = pnand %p2825_p13, %p2819_p8 }
 0x4a1   : > { %2829 = shalt.err (!%p2826_p0)
}
 0x4a2   : > { %s2867_s24 = smov 128   ;;  %s2868_s13 = smov 8  }
 0x4a3   : > { %2761 = dma.vmem_to_hbm [thread:$0]  (%p2967_p5), %s3480_s14, 4096, %s3478_s12, %s3487_s21, %s2867_s24, %s2867_s24, %s2868_s13  }
 0x4a4 PF: > { %p2767_p1 = scmp.ge.s32.totalorder %s2864_s20, 2  ;;  %s1932_s30 = sand.u32 1, %s2852_s17  }
 0x4a5   : > { %s1933_s22 = scalar_lea.sflag [#allocation3], %s1932_s30 }
 0x4a6   : > { %p2764_p2 = pnand %p2767_p1, %p2971_p6 }
 0x4a8   : > { %2847 = dma.done.wait (!%p2764_p2), %s1933_s22, 4096  }
 0x4a9   : > { %2849 = vsyncadd (!%p2764_p2), %s1933_s22, 4294963200  ;;  %p21_p3 = scmp.ge.s32.totalorder %s2954_s23, 4   ;;  %s3542_s17 = smov %s2856_s18 }
 0x4aa   : > { %s3543_s18 = smov %s2860_s19  ;;  %s3544_s19 = smov %s2965_s26 }
 0x4ab   : > { %s3545_s20 = smov %s2954_s23  ;;  %23 = sbr.rel (!%p21_p3) target bundleno = 3 (0x3), region = 99 }
 0x4b2   :  { %1938 = vsyncpa [#allocation3], 1 }
 0x4b3   :  { %1940 = vsyncpa [#allocation3 + $0x1], 1 }

</bundles_post_ra>
